<compile_context>
chip_gen: v5e
topology: v5e:2x2
jax: 0.10.0
libtpu: 0.0.40
codegen_flags: <defaults>
</compile_context>

<pallas_src>
import functools

import jax
import jax.numpy as jnp
from jax.experimental import pallas as pl
from jax.experimental.pallas import tpu as pltpu


def _mobius_quate_kernel(x_ref,           # SMEM (B, 3) int32 (scalar prefetch)
                         ent_hbm,         # HBM  (n_ent, 16r) f32
                         rel_ref,         # VMEM (n_rel, 16r) f32 (whole table)
                         e4t_ref,         # VMEM (4r, n_ent)  f32/bf16 (pre-T)
                         scores_ref,      # out  (B, n_ent)   f32
                         reg_ref,         # out  (3, B, r)    f32
                         lhs_buf,         # VMEM (B, 4r) f32 scratch
                         rhs_buf,         # VMEM (B, 4r) f32 scratch
                         sem,             # DMA sems (2, B)
                         *, rank: int, batch: int):
    r = rank
    B = batch

    # ---- fused embedding gather: only the 4r columns actually used ----------
    lhs_copies = []
    rhs_copies = []
    for b in range(B):  # B is a small static Python int -> unrolled
        lhs_copies.append(pltpu.make_async_copy(
            ent_hbm.at[pl.ds(x_ref[b, 0], 1), pl.ds(0, 4 * r)],
            lhs_buf.at[pl.ds(b, 1)], sem.at[0, b]))
        rhs_copies.append(pltpu.make_async_copy(
            ent_hbm.at[pl.ds(x_ref[b, 2], 1), pl.ds(0, 4 * r)],
            rhs_buf.at[pl.ds(b, 1)], sem.at[1, b]))
    for cp in lhs_copies + rhs_copies:
        cp.start()

    # Relation rows: the table is VMEM-resident -> direct dynamic row loads,
    # no DMA descriptors needed.
    rel = jnp.concatenate(
        [rel_ref[pl.ds(x_ref[b, 1], 1), :] for b in range(B)], axis=0)  # (B,16r)

    def comp(a, i):
        return a[:, i * r:(i + 1) * r]

    ra = [comp(rel, i) for i in range(0, 4)]      # relation_a (re,i,j,k)
    rb = [comp(rel, i) for i in range(4, 8)]      # relation_b
    rc = [comp(rel, i) for i in range(8, 12)]     # relation_c
    rd = [comp(rel, i) for i in range(12, 16)]    # relation_d

    # Relation regularizer needs only rel -> emit while the gathers fly.
    reg_ref[1] = jnp.sqrt(sum(p * p for p in (ra + rb + rc + rd)))

    # Head rows are needed for the Mobius math: wait on them only.
    for cp in lhs_copies:
        cp.wait()
    lhs = lhs_buf[...]                            # (B, 4r)
    re_h, i_h, j_h, k_h = comp(lhs, 0), comp(lhs, 1), comp(lhs, 2), comp(lhs, 3)

    reg_ref[0] = jnp.sqrt(re_h * re_h + i_h * i_h + j_h * j_h + k_h * k_h)

    def hamilton(rr, ii, jj, kk):   # head (x) relation, exactly as in torch
        return (re_h * rr - i_h * ii - j_h * jj - k_h * kk,
                re_h * ii + i_h * rr + j_h * kk - k_h * jj,
                re_h * jj - i_h * kk + j_h * rr + k_h * ii,
                re_h * kk + i_h * jj - j_h * ii + k_h * rr)

    sa = hamilton(*ra)
    top = [sa[n] + rb[n] for n in range(4)]
    sc = hamilton(*rc)
    dn = [sc[n] + rd[n] for n in range(4)]

    # sqrt + one true division (parity with the torch sqrt-then-div path).
    dn_re = jnp.sqrt(dn[0] * dn[0] + dn[1] * dn[1]
                     + dn[2] * dn[2] + dn[3] * dn[3])
    inv_dn = 1.0 / dn_re

    up_re = (top[0] * dn[0] + top[1] * dn[1]
             + top[2] * dn[2] + top[3] * dn[3]) * inv_dn
    up_i = (-top[0] * dn[1] + top[1] * dn[0]
            - top[2] * dn[3] + top[3] * dn[2]) * inv_dn
    up_j = (-top[0] * dn[2] + top[1] * dn[3]
            + top[2] * dn[0] - top[3] * dn[1]) * inv_dn
    up_k = (-top[0] * dn[3] - top[1] * dn[2]
            + top[2] * dn[1] + top[3] * dn[0]) * inv_dn

    # Assemble the (B, 4r) query directly from registers (no scratch round trip)
    # and hit the MXU once against the lane-dense (4r, n_ent) slab.
    up = jnp.concatenate([up_re, up_i, up_j, up_k], axis=1)
    e4t = e4t_ref[...]
    scores_ref[...] = jnp.dot(up.astype(e4t.dtype), e4t,
                              preferred_element_type=jnp.float32)

    # Tail rows are only needed for the tail regularizer -> wait as late as
    # possible so their DMA latency is hidden behind the math above.
    for cp in rhs_copies:
        cp.wait()
    rhs = rhs_buf[...]                            # (B, 4r)
    re_t, i_t, j_t, k_t = comp(rhs, 0), comp(rhs, 1), comp(rhs, 2), comp(rhs, 3)
    reg_ref[2] = jnp.sqrt(re_t * re_t + i_t * i_t + j_t * j_t + k_t * k_t)


def prepare_scoring_slab(ent_emb, rank, score_dtype=jnp.float32):
    """Pre-transpose (and optionally down-cast) the entity scoring slab ONCE.

    Done outside the per-call forward so the mem-bound score matmul does not
    pay an extra full HBM read+write of the slab on every call. Use
    score_dtype=jnp.bfloat16 for large entity tables to halve scoring
    bandwidth (accumulation stays f32 in the kernel).
    """
    return jnp.asarray(ent_emb[:, :4 * rank].T, dtype=score_dtype)


@functools.partial(jax.jit, static_argnums=(4,))
def mobius_quate_forward(x, ent_emb, rel_emb, e4t, rank):
    """x: (B, 3) int32; ent_emb: (n_ent, 16r); rel_emb: (n_rel, 16r);
    e4t: (4r, n_ent) from prepare_scoring_slab."""
    B = x.shape[0]
    n_ent, ent_width = ent_emb.shape
    assert ent_width == 16 * rank and rel_emb.shape[1] == 16 * rank
    assert e4t.shape == (4 * rank, n_ent)

    kernel = functools.partial(_mobius_quate_kernel, rank=rank, batch=B)

    out_shapes = (
        jax.ShapeDtypeStruct((B, n_ent), jnp.float32),      # scores
        jax.ShapeDtypeStruct((3, B, rank), jnp.float32),    # reg head/rel/tail
    )

    grid_spec = pltpu.PrefetchScalarGridSpec(
        num_scalar_prefetch=1,                              # x -> SMEM
        grid=(1,),                                          # single step
        in_specs=[
            # ent_emb stays in HBM; only the queried rows are DMA'd.
            pl.BlockSpec(memory_space=pl.ANY),
            # Tiny relation table: whole array resident in VMEM (single copy).
            pl.BlockSpec(memory_space=pltpu.MemorySpace.VMEM),
            # Scoring slab: whole array in VMEM, single-buffered (grid=(1,)).
            pl.BlockSpec(memory_space=pltpu.MemorySpace.VMEM),
        ],
        out_specs=[
            pl.BlockSpec((B, n_ent), lambda i, xs: (0, 0)),
            pl.BlockSpec((3, B, rank), lambda i, xs: (0, 0, 0)),
        ],
        scratch_shapes=[
            pltpu.VMEM((B, 4 * rank), jnp.float32),         # gathered head rows
            pltpu.VMEM((B, 4 * rank), jnp.float32),         # gathered tail rows
            pltpu.SemaphoreType.DMA((2, B)),                # one sem per gather
        ],
    )

    scores, reg = pl.pallas_call(
        kernel,
        out_shape=out_shapes,
        grid_spec=grid_spec,
        compiler_params=pltpu.CompilerParams(
            dimension_semantics=("arbitrary",)),
    )(x, ent_emb, rel_emb, e4t)

    return scores, (reg[0], reg[1], reg[2])


def _reference_forward(x, ent_emb, rel_emb, rank):
    """Pure-JAX mirror of MobiusQuatE.forward (for validation)."""
    r = rank
    lhs = ent_emb[x[:, 0]]
    rel = rel_emb[x[:, 1]]
    rhs = ent_emb[x[:, 2]]
    sl = lambda a, i: a[:, i * r:(i + 1) * r]
    re_h, i_h, j_h, k_h = sl(lhs, 0), sl(lhs, 1), sl(lhs, 2), sl(lhs, 3)
    re_t, i_t, j_t, k_t = sl(rhs, 0), sl(rhs, 1), sl(rhs, 2), sl(rhs, 3)
    ra = [sl(rel, i) for i in range(0, 4)]
    rb = [sl(rel, i) for i in range(4, 8)]
    rc = [sl(rel, i) for i in range(8, 12)]
    rd = [sl(rel, i) for i in range(12, 16)]

    def ham(rr, ii, jj, kk):
        return (re_h * rr - i_h * ii - j_h * jj - k_h * kk,
                re_h * ii + i_h * rr + j_h * kk - k_h * jj,
                re_h * jj - i_h * kk + j_h * rr + k_h * ii,
                re_h * kk + i_h * jj - j_h * ii + k_h * rr)

    sa = ham(*ra)
    top = [sa[n] + rb[n] for n in range(4)]
    sc = ham(*rc)
    dn = [sc[n] + rd[n] for n in range(4)]
    dn_re = jnp.sqrt(dn[0] ** 2 + dn[1] ** 2 + dn[2] ** 2 + dn[3] ** 2)
    up = [
        (top[0] * dn[0] + top[1] * dn[1] + top[2] * dn[2] + top[3] * dn[3]) / dn_re,
        (-top[0] * dn[1] + top[1] * dn[0] - top[2] * dn[3] + top[3] * dn[2]) / dn_re,
        (-top[0] * dn[2] + top[1] * dn[3] + top[2] * dn[0] - top[3] * dn[1]) / dn_re,
        (-top[0] * dn[3] - top[1] * dn[2] + top[2] * dn[1] + top[3] * dn[0]) / dn_re,
    ]
    to_score = [sl(ent_emb, i) for i in range(4)]
    scores = sum(jnp.dot(up[c], to_score[c].T,
                         precision=jax.lax.Precision.HIGHEST) for c in range(4))
    reg_h = jnp.sqrt(re_h ** 2 + i_h ** 2 + j_h ** 2 + k_h ** 2)
    reg_r = jnp.sqrt(sum(p ** 2 for p in (ra + rb + rc + rd)))
    reg_t = jnp.sqrt(re_t ** 2 + i_t ** 2 + j_t ** 2 + k_t ** 2)
    return scores, (reg_h, reg_r, reg_t)


if __name__ == "__main__":
    B = 8
    rank = 32
    n_ent = 256
    n_rel = 16
    init_size = 0.001

    key = jax.random.PRNGKey(0)
    k_ent, k_rel, k_h, k_r, k_t = jax.random.split(key, 5)

    # nn.Embedding default init ~ N(0, 1), scaled by init_size (as in __init__).
    ent_emb = jax.random.normal(k_ent, (n_ent, 16 * rank), jnp.float32) * init_size
    rel_emb = jax.random.normal(k_rel, (n_rel, 16 * rank), jnp.float32) * init_size

    x = jnp.stack([
        jax.random.randint(k_h, (B,), 0, n_ent),
        jax.random.randint(k_r, (B,), 0, n_rel),
        jax.random.randint(k_t, (B,), 0, n_ent),
    ], axis=1).astype(jnp.int32)

    # Prepared once and reused across forward calls (per perf feedback).
    # Use score_dtype=jnp.bfloat16 here for large entity tables.
    e4t = prepare_scoring_slab(ent_emb, rank, score_dtype=jnp.float32)

    scores, (reg_h, reg_r, reg_t) = mobius_quate_forward(x, ent_emb, rel_emb, e4t, rank)
    jax.block_until_ready((scores, reg_h, reg_r, reg_t))

    # Validate against the pure-JAX reference of the torch forward.
    ref_scores, (ref_h, ref_r, ref_t) = _reference_forward(x, ent_emb, rel_emb, rank)
    assert scores.shape == (B, n_ent)
    assert reg_h.shape == (B, rank) and reg_r.shape == (B, rank) and reg_t.shape == (B, rank)
    assert jnp.allclose(scores, ref_scores, rtol=1e-3, atol=1e-7)
    assert jnp.allclose(reg_h, ref_h, rtol=1e-4, atol=1e-8)
    assert jnp.allclose(reg_r, ref_r, rtol=1e-4, atol=1e-8)
    assert jnp.allclose(reg_t, ref_t, rtol=1e-4, atol=1e-8)

    print("KERNEL_OK")
</pallas_src>

<mosaic_0001>
module attributes {stable_mosaic.version = 11 : i64} {
  func.func @_mobius_quate_kernel(%arg0: i32, %arg1: memref<8x3xi32, #tpu.memory_space<smem>>, %arg2: memref<256x512xf32, #tpu.memory_space<any>>, %arg3: memref<16x512xf32, #tpu.memory_space<vmem>>, %arg4: memref<128x256xf32, #tpu.memory_space<vmem>>, %arg5: memref<8x256xf32, #tpu.memory_space<vmem>>, %arg6: memref<3x8x32xf32, #tpu.memory_space<vmem>>, %arg7: memref<8x128xf32, #tpu.memory_space<vmem>>, %arg8: memref<8x128xf32, #tpu.memory_space<vmem>>, %arg9: memref<2x8x!tpu.dma_semaphore, #tpu.memory_space<semaphore_mem>>) attributes {dimension_semantics = [#tpu.dimension_semantics<arbitrary>], iteration_bounds = array<i64: 1>, scalar_prefetch = 1 : i64, scratch_operands = 3 : i64, tpu.core_type = #tpu.core_type<tc>, window_params = [{}, {pipeline_mode = #tpu.pipeline_mode<synchronous>, transform_indices = @transform_1, window_bounds = array<i64: 16, 512>}, {pipeline_mode = #tpu.pipeline_mode<synchronous>, transform_indices = @transform_2, window_bounds = array<i64: 128, 256>}, {pipeline_mode = #tpu.pipeline_mode<synchronous>, transform_indices = @transform_3, window_bounds = array<i64: 8, 256>}, {pipeline_mode = #tpu.pipeline_mode<synchronous>, transform_indices = @transform_4, window_bounds = array<i64: 3, 8, 32>}]} {
    %c0 = arith.constant 0 : index
    %c0_0 = arith.constant 0 : index
    %0 = memref.load %arg1[%c0, %c0_0] : memref<8x3xi32, #tpu.memory_space<smem>>
    %c0_1 = arith.constant 0 : index
    %c2 = arith.constant 2 : index
    %1 = memref.load %arg1[%c0_1, %c2] : memref<8x3xi32, #tpu.memory_space<smem>>
    %c1 = arith.constant 1 : index
    %c0_2 = arith.constant 0 : index
    %2 = memref.load %arg1[%c1, %c0_2] : memref<8x3xi32, #tpu.memory_space<smem>>
    %c1_3 = arith.constant 1 : index
    %c2_4 = arith.constant 2 : index
    %3 = memref.load %arg1[%c1_3, %c2_4] : memref<8x3xi32, #tpu.memory_space<smem>>
    %c2_5 = arith.constant 2 : index
    %c0_6 = arith.constant 0 : index
    %4 = memref.load %arg1[%c2_5, %c0_6] : memref<8x3xi32, #tpu.memory_space<smem>>
    %c2_7 = arith.constant 2 : index
    %c2_8 = arith.constant 2 : index
    %5 = memref.load %arg1[%c2_7, %c2_8] : memref<8x3xi32, #tpu.memory_space<smem>>
    %c3 = arith.constant 3 : index
    %c0_9 = arith.constant 0 : index
    %6 = memref.load %arg1[%c3, %c0_9] : memref<8x3xi32, #tpu.memory_space<smem>>
    %c3_10 = arith.constant 3 : index
    %c2_11 = arith.constant 2 : index
    %7 = memref.load %arg1[%c3_10, %c2_11] : memref<8x3xi32, #tpu.memory_space<smem>>
    %c4 = arith.constant 4 : index
    %c0_12 = arith.constant 0 : index
    %8 = memref.load %arg1[%c4, %c0_12] : memref<8x3xi32, #tpu.memory_space<smem>>
    %c4_13 = arith.constant 4 : index
    %c2_14 = arith.constant 2 : index
    %9 = memref.load %arg1[%c4_13, %c2_14] : memref<8x3xi32, #tpu.memory_space<smem>>
    %c5 = arith.constant 5 : index
    %c0_15 = arith.constant 0 : index
    %10 = memref.load %arg1[%c5, %c0_15] : memref<8x3xi32, #tpu.memory_space<smem>>
    %c5_16 = arith.constant 5 : index
    %c2_17 = arith.constant 2 : index
    %11 = memref.load %arg1[%c5_16, %c2_17] : memref<8x3xi32, #tpu.memory_space<smem>>
    %c6 = arith.constant 6 : index
    %c0_18 = arith.constant 0 : index
    %12 = memref.load %arg1[%c6, %c0_18] : memref<8x3xi32, #tpu.memory_space<smem>>
    %c6_19 = arith.constant 6 : index
    %c2_20 = arith.constant 2 : index
    %13 = memref.load %arg1[%c6_19, %c2_20] : memref<8x3xi32, #tpu.memory_space<smem>>
    %c7 = arith.constant 7 : index
    %c0_21 = arith.constant 0 : index
    %14 = memref.load %arg1[%c7, %c0_21] : memref<8x3xi32, #tpu.memory_space<smem>>
    %c7_22 = arith.constant 7 : index
    %c2_23 = arith.constant 2 : index
    %15 = memref.load %arg1[%c7_22, %c2_23] : memref<8x3xi32, #tpu.memory_space<smem>>
    %c0_i32 = arith.constant 0 : i32
    %c0_i32_24 = arith.constant 0 : i32
    %c0_i32_25 = arith.constant 0 : i32
    %16 = tpu.memref_slice %arg2[%0, %c0_i32_25] : memref<256x512xf32, #tpu.memory_space<any>> -> memref<1x128xf32, #tpu.memory_space<any>>
    %c0_i32_26 = arith.constant 0 : i32
    %c0_i32_27 = arith.constant 0 : i32
    %17 = tpu.memref_slice %arg7[%c0_i32_26, %c0_i32_27] : memref<8x128xf32, #tpu.memory_space<vmem>> -> memref<1x128xf32, #tpu.memory_space<vmem>>
    %18 = tpu.memref_slice %arg9[%c0_i32, %c0_i32_24] : memref<2x8x!tpu.dma_semaphore, #tpu.memory_space<semaphore_mem>> -> memref<1x1x!tpu.dma_semaphore, #tpu.memory_space<semaphore_mem>>
    %19 = tpu.memref_squeeze %18 : memref<1x1x!tpu.dma_semaphore, #tpu.memory_space<semaphore_mem>> -> memref<!tpu.dma_semaphore, #tpu.memory_space<semaphore_mem>>
    tpu.enqueue_dma source(%16 : memref<1x128xf32, #tpu.memory_space<any>>) target(%17 : memref<1x128xf32, #tpu.memory_space<vmem>>) target_semaphore(%19 : memref<!tpu.dma_semaphore, #tpu.memory_space<semaphore_mem>>)
    %c0_i32_28 = arith.constant 0 : i32
    %c1_i32 = arith.constant 1 : i32
    %c0_i32_29 = arith.constant 0 : i32
    %20 = tpu.memref_slice %arg2[%2, %c0_i32_29] : memref<256x512xf32, #tpu.memory_space<any>> -> memref<1x128xf32, #tpu.memory_space<any>>
    %c1_i32_30 = arith.constant 1 : i32
    %c0_i32_31 = arith.constant 0 : i32
    %21 = tpu.memref_slice %arg7[%c1_i32_30, %c0_i32_31] : memref<8x128xf32, #tpu.memory_space<vmem>> -> memref<1x128xf32, #tpu.memory_space<vmem>>
    %22 = tpu.memref_slice %arg9[%c0_i32_28, %c1_i32] : memref<2x8x!tpu.dma_semaphore, #tpu.memory_space<semaphore_mem>> -> memref<1x1x!tpu.dma_semaphore, #tpu.memory_space<semaphore_mem>>
    %23 = tpu.memref_squeeze %22 : memref<1x1x!tpu.dma_semaphore, #tpu.memory_space<semaphore_mem>> -> memref<!tpu.dma_semaphore, #tpu.memory_space<semaphore_mem>>
    tpu.enqueue_dma source(%20 : memref<1x128xf32, #tpu.memory_space<any>>) target(%21 : memref<1x128xf32, #tpu.memory_space<vmem>>) target_semaphore(%23 : memref<!tpu.dma_semaphore, #tpu.memory_space<semaphore_mem>>)
    %c0_i32_32 = arith.constant 0 : i32
    %c2_i32 = arith.constant 2 : i32
    %c0_i32_33 = arith.constant 0 : i32
    %24 = tpu.memref_slice %arg2[%4, %c0_i32_33] : memref<256x512xf32, #tpu.memory_space<any>> -> memref<1x128xf32, #tpu.memory_space<any>>
    %c2_i32_34 = arith.constant 2 : i32
    %c0_i32_35 = arith.constant 0 : i32
    %25 = tpu.memref_slice %arg7[%c2_i32_34, %c0_i32_35] : memref<8x128xf32, #tpu.memory_space<vmem>> -> memref<1x128xf32, #tpu.memory_space<vmem>>
    %26 = tpu.memref_slice %arg9[%c0_i32_32, %c2_i32] : memref<2x8x!tpu.dma_semaphore, #tpu.memory_space<semaphore_mem>> -> memref<1x1x!tpu.dma_semaphore, #tpu.memory_space<semaphore_mem>>
    %27 = tpu.memref_squeeze %26 : memref<1x1x!tpu.dma_semaphore, #tpu.memory_space<semaphore_mem>> -> memref<!tpu.dma_semaphore, #tpu.memory_space<semaphore_mem>>
    tpu.enqueue_dma source(%24 : memref<1x128xf32, #tpu.memory_space<any>>) target(%25 : memref<1x128xf32, #tpu.memory_space<vmem>>) target_semaphore(%27 : memref<!tpu.dma_semaphore, #tpu.memory_space<semaphore_mem>>)
    %c0_i32_36 = arith.constant 0 : i32
    %c3_i32 = arith.constant 3 : i32
    %c0_i32_37 = arith.constant 0 : i32
    %28 = tpu.memref_slice %arg2[%6, %c0_i32_37] : memref<256x512xf32, #tpu.memory_space<any>> -> memref<1x128xf32, #tpu.memory_space<any>>
    %c3_i32_38 = arith.constant 3 : i32
    %c0_i32_39 = arith.constant 0 : i32
    %29 = tpu.memref_slice %arg7[%c3_i32_38, %c0_i32_39] : memref<8x128xf32, #tpu.memory_space<vmem>> -> memref<1x128xf32, #tpu.memory_space<vmem>>
    %30 = tpu.memref_slice %arg9[%c0_i32_36, %c3_i32] : memref<2x8x!tpu.dma_semaphore, #tpu.memory_space<semaphore_mem>> -> memref<1x1x!tpu.dma_semaphore, #tpu.memory_space<semaphore_mem>>
    %31 = tpu.memref_squeeze %30 : memref<1x1x!tpu.dma_semaphore, #tpu.memory_space<semaphore_mem>> -> memref<!tpu.dma_semaphore, #tpu.memory_space<semaphore_mem>>
    tpu.enqueue_dma source(%28 : memref<1x128xf32, #tpu.memory_space<any>>) target(%29 : memref<1x128xf32, #tpu.memory_space<vmem>>) target_semaphore(%31 : memref<!tpu.dma_semaphore, #tpu.memory_space<semaphore_mem>>)
    %c0_i32_40 = arith.constant 0 : i32
    %c4_i32 = arith.constant 4 : i32
    %c0_i32_41 = arith.constant 0 : i32
    %32 = tpu.memref_slice %arg2[%8, %c0_i32_41] : memref<256x512xf32, #tpu.memory_space<any>> -> memref<1x128xf32, #tpu.memory_space<any>>
    %c4_i32_42 = arith.constant 4 : i32
    %c0_i32_43 = arith.constant 0 : i32
    %33 = tpu.memref_slice %arg7[%c4_i32_42, %c0_i32_43] : memref<8x128xf32, #tpu.memory_space<vmem>> -> memref<1x128xf32, #tpu.memory_space<vmem>>
    %34 = tpu.memref_slice %arg9[%c0_i32_40, %c4_i32] : memref<2x8x!tpu.dma_semaphore, #tpu.memory_space<semaphore_mem>> -> memref<1x1x!tpu.dma_semaphore, #tpu.memory_space<semaphore_mem>>
    %35 = tpu.memref_squeeze %34 : memref<1x1x!tpu.dma_semaphore, #tpu.memory_space<semaphore_mem>> -> memref<!tpu.dma_semaphore, #tpu.memory_space<semaphore_mem>>
    tpu.enqueue_dma source(%32 : memref<1x128xf32, #tpu.memory_space<any>>) target(%33 : memref<1x128xf32, #tpu.memory_space<vmem>>) target_semaphore(%35 : memref<!tpu.dma_semaphore, #tpu.memory_space<semaphore_mem>>)
    %c0_i32_44 = arith.constant 0 : i32
    %c5_i32 = arith.constant 5 : i32
    %c0_i32_45 = arith.constant 0 : i32
    %36 = tpu.memref_slice %arg2[%10, %c0_i32_45] : memref<256x512xf32, #tpu.memory_space<any>> -> memref<1x128xf32, #tpu.memory_space<any>>
    %c5_i32_46 = arith.constant 5 : i32
    %c0_i32_47 = arith.constant 0 : i32
    %37 = tpu.memref_slice %arg7[%c5_i32_46, %c0_i32_47] : memref<8x128xf32, #tpu.memory_space<vmem>> -> memref<1x128xf32, #tpu.memory_space<vmem>>
    %38 = tpu.memref_slice %arg9[%c0_i32_44, %c5_i32] : memref<2x8x!tpu.dma_semaphore, #tpu.memory_space<semaphore_mem>> -> memref<1x1x!tpu.dma_semaphore, #tpu.memory_space<semaphore_mem>>
    %39 = tpu.memref_squeeze %38 : memref<1x1x!tpu.dma_semaphore, #tpu.memory_space<semaphore_mem>> -> memref<!tpu.dma_semaphore, #tpu.memory_space<semaphore_mem>>
    tpu.enqueue_dma source(%36 : memref<1x128xf32, #tpu.memory_space<any>>) target(%37 : memref<1x128xf32, #tpu.memory_space<vmem>>) target_semaphore(%39 : memref<!tpu.dma_semaphore, #tpu.memory_space<semaphore_mem>>)
    %c0_i32_48 = arith.constant 0 : i32
    %c6_i32 = arith.constant 6 : i32
    %c0_i32_49 = arith.constant 0 : i32
    %40 = tpu.memref_slice %arg2[%12, %c0_i32_49] : memref<256x512xf32, #tpu.memory_space<any>> -> memref<1x128xf32, #tpu.memory_space<any>>
    %c6_i32_50 = arith.constant 6 : i32
    %c0_i32_51 = arith.constant 0 : i32
    %41 = tpu.memref_slice %arg7[%c6_i32_50, %c0_i32_51] : memref<8x128xf32, #tpu.memory_space<vmem>> -> memref<1x128xf32, #tpu.memory_space<vmem>>
    %42 = tpu.memref_slice %arg9[%c0_i32_48, %c6_i32] : memref<2x8x!tpu.dma_semaphore, #tpu.memory_space<semaphore_mem>> -> memref<1x1x!tpu.dma_semaphore, #tpu.memory_space<semaphore_mem>>
    %43 = tpu.memref_squeeze %42 : memref<1x1x!tpu.dma_semaphore, #tpu.memory_space<semaphore_mem>> -> memref<!tpu.dma_semaphore, #tpu.memory_space<semaphore_mem>>
    tpu.enqueue_dma source(%40 : memref<1x128xf32, #tpu.memory_space<any>>) target(%41 : memref<1x128xf32, #tpu.memory_space<vmem>>) target_semaphore(%43 : memref<!tpu.dma_semaphore, #tpu.memory_space<semaphore_mem>>)
    %c0_i32_52 = arith.constant 0 : i32
    %c7_i32 = arith.constant 7 : i32
    %c0_i32_53 = arith.constant 0 : i32
    %44 = tpu.memref_slice %arg2[%14, %c0_i32_53] : memref<256x512xf32, #tpu.memory_space<any>> -> memref<1x128xf32, #tpu.memory_space<any>>
    %c7_i32_54 = arith.constant 7 : i32
    %c0_i32_55 = arith.constant 0 : i32
    %45 = tpu.memref_slice %arg7[%c7_i32_54, %c0_i32_55] : memref<8x128xf32, #tpu.memory_space<vmem>> -> memref<1x128xf32, #tpu.memory_space<vmem>>
    %46 = tpu.memref_slice %arg9[%c0_i32_52, %c7_i32] : memref<2x8x!tpu.dma_semaphore, #tpu.memory_space<semaphore_mem>> -> memref<1x1x!tpu.dma_semaphore, #tpu.memory_space<semaphore_mem>>
    %47 = tpu.memref_squeeze %46 : memref<1x1x!tpu.dma_semaphore, #tpu.memory_space<semaphore_mem>> -> memref<!tpu.dma_semaphore, #tpu.memory_space<semaphore_mem>>
    tpu.enqueue_dma source(%44 : memref<1x128xf32, #tpu.memory_space<any>>) target(%45 : memref<1x128xf32, #tpu.memory_space<vmem>>) target_semaphore(%47 : memref<!tpu.dma_semaphore, #tpu.memory_space<semaphore_mem>>)
    %c1_i32_56 = arith.constant 1 : i32
    %c0_i32_57 = arith.constant 0 : i32
    %c0_i32_58 = arith.constant 0 : i32
    %48 = tpu.memref_slice %arg2[%1, %c0_i32_58] : memref<256x512xf32, #tpu.memory_space<any>> -> memref<1x128xf32, #tpu.memory_space<any>>
    %c0_i32_59 = arith.constant 0 : i32
    %c0_i32_60 = arith.constant 0 : i32
    %49 = tpu.memref_slice %arg8[%c0_i32_59, %c0_i32_60] : memref<8x128xf32, #tpu.memory_space<vmem>> -> memref<1x128xf32, #tpu.memory_space<vmem>>
    %50 = tpu.memref_slice %arg9[%c1_i32_56, %c0_i32_57] : memref<2x8x!tpu.dma_semaphore, #tpu.memory_space<semaphore_mem>> -> memref<1x1x!tpu.dma_semaphore, #tpu.memory_space<semaphore_mem>>
    %51 = tpu.memref_squeeze %50 : memref<1x1x!tpu.dma_semaphore, #tpu.memory_space<semaphore_mem>> -> memref<!tpu.dma_semaphore, #tpu.memory_space<semaphore_mem>>
    tpu.enqueue_dma source(%48 : memref<1x128xf32, #tpu.memory_space<any>>) target(%49 : memref<1x128xf32, #tpu.memory_space<vmem>>) target_semaphore(%51 : memref<!tpu.dma_semaphore, #tpu.memory_space<semaphore_mem>>)
    %c1_i32_61 = arith.constant 1 : i32
    %c1_i32_62 = arith.constant 1 : i32
    %c0_i32_63 = arith.constant 0 : i32
    %52 = tpu.memref_slice %arg2[%3, %c0_i32_63] : memref<256x512xf32, #tpu.memory_space<any>> -> memref<1x128xf32, #tpu.memory_space<any>>
    %c1_i32_64 = arith.constant 1 : i32
    %c0_i32_65 = arith.constant 0 : i32
    %53 = tpu.memref_slice %arg8[%c1_i32_64, %c0_i32_65] : memref<8x128xf32, #tpu.memory_space<vmem>> -> memref<1x128xf32, #tpu.memory_space<vmem>>
    %54 = tpu.memref_slice %arg9[%c1_i32_61, %c1_i32_62] : memref<2x8x!tpu.dma_semaphore, #tpu.memory_space<semaphore_mem>> -> memref<1x1x!tpu.dma_semaphore, #tpu.memory_space<semaphore_mem>>
    %55 = tpu.memref_squeeze %54 : memref<1x1x!tpu.dma_semaphore, #tpu.memory_space<semaphore_mem>> -> memref<!tpu.dma_semaphore, #tpu.memory_space<semaphore_mem>>
    tpu.enqueue_dma source(%52 : memref<1x128xf32, #tpu.memory_space<any>>) target(%53 : memref<1x128xf32, #tpu.memory_space<vmem>>) target_semaphore(%55 : memref<!tpu.dma_semaphore, #tpu.memory_space<semaphore_mem>>)
    %c1_i32_66 = arith.constant 1 : i32
    %c2_i32_67 = arith.constant 2 : i32
    %c0_i32_68 = arith.constant 0 : i32
    %56 = tpu.memref_slice %arg2[%5, %c0_i32_68] : memref<256x512xf32, #tpu.memory_space<any>> -> memref<1x128xf32, #tpu.memory_space<any>>
    %c2_i32_69 = arith.constant 2 : i32
    %c0_i32_70 = arith.constant 0 : i32
    %57 = tpu.memref_slice %arg8[%c2_i32_69, %c0_i32_70] : memref<8x128xf32, #tpu.memory_space<vmem>> -> memref<1x128xf32, #tpu.memory_space<vmem>>
    %58 = tpu.memref_slice %arg9[%c1_i32_66, %c2_i32_67] : memref<2x8x!tpu.dma_semaphore, #tpu.memory_space<semaphore_mem>> -> memref<1x1x!tpu.dma_semaphore, #tpu.memory_space<semaphore_mem>>
    %59 = tpu.memref_squeeze %58 : memref<1x1x!tpu.dma_semaphore, #tpu.memory_space<semaphore_mem>> -> memref<!tpu.dma_semaphore, #tpu.memory_space<semaphore_mem>>
    tpu.enqueue_dma source(%56 : memref<1x128xf32, #tpu.memory_space<any>>) target(%57 : memref<1x128xf32, #tpu.memory_space<vmem>>) target_semaphore(%59 : memref<!tpu.dma_semaphore, #tpu.memory_space<semaphore_mem>>)
    %c1_i32_71 = arith.constant 1 : i32
    %c3_i32_72 = arith.constant 3 : i32
    %c0_i32_73 = arith.constant 0 : i32
    %60 = tpu.memref_slice %arg2[%7, %c0_i32_73] : memref<256x512xf32, #tpu.memory_space<any>> -> memref<1x128xf32, #tpu.memory_space<any>>
    %c3_i32_74 = arith.constant 3 : i32
    %c0_i32_75 = arith.constant 0 : i32
    %61 = tpu.memref_slice %arg8[%c3_i32_74, %c0_i32_75] : memref<8x128xf32, #tpu.memory_space<vmem>> -> memref<1x128xf32, #tpu.memory_space<vmem>>
    %62 = tpu.memref_slice %arg9[%c1_i32_71, %c3_i32_72] : memref<2x8x!tpu.dma_semaphore, #tpu.memory_space<semaphore_mem>> -> memref<1x1x!tpu.dma_semaphore, #tpu.memory_space<semaphore_mem>>
    %63 = tpu.memref_squeeze %62 : memref<1x1x!tpu.dma_semaphore, #tpu.memory_space<semaphore_mem>> -> memref<!tpu.dma_semaphore, #tpu.memory_space<semaphore_mem>>
    tpu.enqueue_dma source(%60 : memref<1x128xf32, #tpu.memory_space<any>>) target(%61 : memref<1x128xf32, #tpu.memory_space<vmem>>) target_semaphore(%63 : memref<!tpu.dma_semaphore, #tpu.memory_space<semaphore_mem>>)
    %c1_i32_76 = arith.constant 1 : i32
    %c4_i32_77 = arith.constant 4 : i32
    %c0_i32_78 = arith.constant 0 : i32
    %64 = tpu.memref_slice %arg2[%9, %c0_i32_78] : memref<256x512xf32, #tpu.memory_space<any>> -> memref<1x128xf32, #tpu.memory_space<any>>
    %c4_i32_79 = arith.constant 4 : i32
    %c0_i32_80 = arith.constant 0 : i32
    %65 = tpu.memref_slice %arg8[%c4_i32_79, %c0_i32_80] : memref<8x128xf32, #tpu.memory_space<vmem>> -> memref<1x128xf32, #tpu.memory_space<vmem>>
    %66 = tpu.memref_slice %arg9[%c1_i32_76, %c4_i32_77] : memref<2x8x!tpu.dma_semaphore, #tpu.memory_space<semaphore_mem>> -> memref<1x1x!tpu.dma_semaphore, #tpu.memory_space<semaphore_mem>>
    %67 = tpu.memref_squeeze %66 : memref<1x1x!tpu.dma_semaphore, #tpu.memory_space<semaphore_mem>> -> memref<!tpu.dma_semaphore, #tpu.memory_space<semaphore_mem>>
    tpu.enqueue_dma source(%64 : memref<1x128xf32, #tpu.memory_space<any>>) target(%65 : memref<1x128xf32, #tpu.memory_space<vmem>>) target_semaphore(%67 : memref<!tpu.dma_semaphore, #tpu.memory_space<semaphore_mem>>)
    %c1_i32_81 = arith.constant 1 : i32
    %c5_i32_82 = arith.constant 5 : i32
    %c0_i32_83 = arith.constant 0 : i32
    %68 = tpu.memref_slice %arg2[%11, %c0_i32_83] : memref<256x512xf32, #tpu.memory_space<any>> -> memref<1x128xf32, #tpu.memory_space<any>>
    %c5_i32_84 = arith.constant 5 : i32
    %c0_i32_85 = arith.constant 0 : i32
    %69 = tpu.memref_slice %arg8[%c5_i32_84, %c0_i32_85] : memref<8x128xf32, #tpu.memory_space<vmem>> -> memref<1x128xf32, #tpu.memory_space<vmem>>
    %70 = tpu.memref_slice %arg9[%c1_i32_81, %c5_i32_82] : memref<2x8x!tpu.dma_semaphore, #tpu.memory_space<semaphore_mem>> -> memref<1x1x!tpu.dma_semaphore, #tpu.memory_space<semaphore_mem>>
    %71 = tpu.memref_squeeze %70 : memref<1x1x!tpu.dma_semaphore, #tpu.memory_space<semaphore_mem>> -> memref<!tpu.dma_semaphore, #tpu.memory_space<semaphore_mem>>
    tpu.enqueue_dma source(%68 : memref<1x128xf32, #tpu.memory_space<any>>) target(%69 : memref<1x128xf32, #tpu.memory_space<vmem>>) target_semaphore(%71 : memref<!tpu.dma_semaphore, #tpu.memory_space<semaphore_mem>>)
    %c1_i32_86 = arith.constant 1 : i32
    %c6_i32_87 = arith.constant 6 : i32
    %c0_i32_88 = arith.constant 0 : i32
    %72 = tpu.memref_slice %arg2[%13, %c0_i32_88] : memref<256x512xf32, #tpu.memory_space<any>> -> memref<1x128xf32, #tpu.memory_space<any>>
    %c6_i32_89 = arith.constant 6 : i32
    %c0_i32_90 = arith.constant 0 : i32
    %73 = tpu.memref_slice %arg8[%c6_i32_89, %c0_i32_90] : memref<8x128xf32, #tpu.memory_space<vmem>> -> memref<1x128xf32, #tpu.memory_space<vmem>>
    %74 = tpu.memref_slice %arg9[%c1_i32_86, %c6_i32_87] : memref<2x8x!tpu.dma_semaphore, #tpu.memory_space<semaphore_mem>> -> memref<1x1x!tpu.dma_semaphore, #tpu.memory_space<semaphore_mem>>
    %75 = tpu.memref_squeeze %74 : memref<1x1x!tpu.dma_semaphore, #tpu.memory_space<semaphore_mem>> -> memref<!tpu.dma_semaphore, #tpu.memory_space<semaphore_mem>>
    tpu.enqueue_dma source(%72 : memref<1x128xf32, #tpu.memory_space<any>>) target(%73 : memref<1x128xf32, #tpu.memory_space<vmem>>) target_semaphore(%75 : memref<!tpu.dma_semaphore, #tpu.memory_space<semaphore_mem>>)
    %c1_i32_91 = arith.constant 1 : i32
    %c7_i32_92 = arith.constant 7 : i32
    %c0_i32_93 = arith.constant 0 : i32
    %76 = tpu.memref_slice %arg2[%15, %c0_i32_93] : memref<256x512xf32, #tpu.memory_space<any>> -> memref<1x128xf32, #tpu.memory_space<any>>
    %c7_i32_94 = arith.constant 7 : i32
    %c0_i32_95 = arith.constant 0 : i32
    %77 = tpu.memref_slice %arg8[%c7_i32_94, %c0_i32_95] : memref<8x128xf32, #tpu.memory_space<vmem>> -> memref<1x128xf32, #tpu.memory_space<vmem>>
    %78 = tpu.memref_slice %arg9[%c1_i32_91, %c7_i32_92] : memref<2x8x!tpu.dma_semaphore, #tpu.memory_space<semaphore_mem>> -> memref<1x1x!tpu.dma_semaphore, #tpu.memory_space<semaphore_mem>>
    %79 = tpu.memref_squeeze %78 : memref<1x1x!tpu.dma_semaphore, #tpu.memory_space<semaphore_mem>> -> memref<!tpu.dma_semaphore, #tpu.memory_space<semaphore_mem>>
    tpu.enqueue_dma source(%76 : memref<1x128xf32, #tpu.memory_space<any>>) target(%77 : memref<1x128xf32, #tpu.memory_space<vmem>>) target_semaphore(%79 : memref<!tpu.dma_semaphore, #tpu.memory_space<semaphore_mem>>)
    %c0_96 = arith.constant 0 : index
    %c1_97 = arith.constant 1 : index
    %80 = memref.load %arg1[%c0_96, %c1_97] : memref<8x3xi32, #tpu.memory_space<smem>>
    %81 = arith.index_cast %80 : i32 to index
    %c0_98 = arith.constant 0 : index
    %82 = vector.load %arg3[%81, %c0_98] : memref<16x512xf32, #tpu.memory_space<vmem>>, vector<1x512xf32>
    %c1_99 = arith.constant 1 : index
    %c1_100 = arith.constant 1 : index
    %83 = memref.load %arg1[%c1_99, %c1_100] : memref<8x3xi32, #tpu.memory_space<smem>>
    %84 = arith.index_cast %83 : i32 to index
    %c0_101 = arith.constant 0 : index
    %85 = vector.load %arg3[%84, %c0_101] : memref<16x512xf32, #tpu.memory_space<vmem>>, vector<1x512xf32>
    %c2_102 = arith.constant 2 : index
    %c1_103 = arith.constant 1 : index
    %86 = memref.load %arg1[%c2_102, %c1_103] : memref<8x3xi32, #tpu.memory_space<smem>>
    %87 = arith.index_cast %86 : i32 to index
    %c0_104 = arith.constant 0 : index
    %88 = vector.load %arg3[%87, %c0_104] : memref<16x512xf32, #tpu.memory_space<vmem>>, vector<1x512xf32>
    %c3_105 = arith.constant 3 : index
    %c1_106 = arith.constant 1 : index
    %89 = memref.load %arg1[%c3_105, %c1_106] : memref<8x3xi32, #tpu.memory_space<smem>>
    %90 = arith.index_cast %89 : i32 to index
    %c0_107 = arith.constant 0 : index
    %91 = vector.load %arg3[%90, %c0_107] : memref<16x512xf32, #tpu.memory_space<vmem>>, vector<1x512xf32>
    %c4_108 = arith.constant 4 : index
    %c1_109 = arith.constant 1 : index
    %92 = memref.load %arg1[%c4_108, %c1_109] : memref<8x3xi32, #tpu.memory_space<smem>>
    %93 = arith.index_cast %92 : i32 to index
    %c0_110 = arith.constant 0 : index
    %94 = vector.load %arg3[%93, %c0_110] : memref<16x512xf32, #tpu.memory_space<vmem>>, vector<1x512xf32>
    %c5_111 = arith.constant 5 : index
    %c1_112 = arith.constant 1 : index
    %95 = memref.load %arg1[%c5_111, %c1_112] : memref<8x3xi32, #tpu.memory_space<smem>>
    %96 = arith.index_cast %95 : i32 to index
    %c0_113 = arith.constant 0 : index
    %97 = vector.load %arg3[%96, %c0_113] : memref<16x512xf32, #tpu.memory_space<vmem>>, vector<1x512xf32>
    %c6_114 = arith.constant 6 : index
    %c1_115 = arith.constant 1 : index
    %98 = memref.load %arg1[%c6_114, %c1_115] : memref<8x3xi32, #tpu.memory_space<smem>>
    %99 = arith.index_cast %98 : i32 to index
    %c0_116 = arith.constant 0 : index
    %100 = vector.load %arg3[%99, %c0_116] : memref<16x512xf32, #tpu.memory_space<vmem>>, vector<1x512xf32>
    %c7_117 = arith.constant 7 : index
    %c1_118 = arith.constant 1 : index
    %101 = memref.load %arg1[%c7_117, %c1_118] : memref<8x3xi32, #tpu.memory_space<smem>>
    %102 = arith.index_cast %101 : i32 to index
    %c0_119 = arith.constant 0 : index
    %103 = vector.load %arg3[%102, %c0_119] : memref<16x512xf32, #tpu.memory_space<vmem>>, vector<1x512xf32>
    %104 = tpu.concatenate %82, %85, %88, %91, %94, %97, %100, %103 in 0 : vector<1x512xf32>, vector<1x512xf32>, vector<1x512xf32>, vector<1x512xf32>, vector<1x512xf32>, vector<1x512xf32>, vector<1x512xf32>, vector<1x512xf32> -> vector<8x512xf32>
    %105 = vector.extract_strided_slice %104 {offsets = [0, 0], sizes = [8, 32], strides = [1, 1]} : vector<8x512xf32> to vector<8x32xf32>
    %106 = vector.extract_strided_slice %104 {offsets = [0, 32], sizes = [8, 32], strides = [1, 1]} : vector<8x512xf32> to vector<8x32xf32>
    %107 = vector.extract_strided_slice %104 {offsets = [0, 64], sizes = [8, 32], strides = [1, 1]} : vector<8x512xf32> to vector<8x32xf32>
    %108 = vector.extract_strided_slice %104 {offsets = [0, 96], sizes = [8, 32], strides = [1, 1]} : vector<8x512xf32> to vector<8x32xf32>
    %109 = vector.extract_strided_slice %104 {offsets = [0, 128], sizes = [8, 32], strides = [1, 1]} : vector<8x512xf32> to vector<8x32xf32>
    %110 = vector.extract_strided_slice %104 {offsets = [0, 160], sizes = [8, 32], strides = [1, 1]} : vector<8x512xf32> to vector<8x32xf32>
    %111 = vector.extract_strided_slice %104 {offsets = [0, 192], sizes = [8, 32], strides = [1, 1]} : vector<8x512xf32> to vector<8x32xf32>
    %112 = vector.extract_strided_slice %104 {offsets = [0, 224], sizes = [8, 32], strides = [1, 1]} : vector<8x512xf32> to vector<8x32xf32>
    %113 = vector.extract_strided_slice %104 {offsets = [0, 256], sizes = [8, 32], strides = [1, 1]} : vector<8x512xf32> to vector<8x32xf32>
    %114 = vector.extract_strided_slice %104 {offsets = [0, 288], sizes = [8, 32], strides = [1, 1]} : vector<8x512xf32> to vector<8x32xf32>
    %115 = vector.extract_strided_slice %104 {offsets = [0, 320], sizes = [8, 32], strides = [1, 1]} : vector<8x512xf32> to vector<8x32xf32>
    %116 = vector.extract_strided_slice %104 {offsets = [0, 352], sizes = [8, 32], strides = [1, 1]} : vector<8x512xf32> to vector<8x32xf32>
    %117 = vector.extract_strided_slice %104 {offsets = [0, 384], sizes = [8, 32], strides = [1, 1]} : vector<8x512xf32> to vector<8x32xf32>
    %118 = vector.extract_strided_slice %104 {offsets = [0, 416], sizes = [8, 32], strides = [1, 1]} : vector<8x512xf32> to vector<8x32xf32>
    %119 = vector.extract_strided_slice %104 {offsets = [0, 448], sizes = [8, 32], strides = [1, 1]} : vector<8x512xf32> to vector<8x32xf32>
    %120 = vector.extract_strided_slice %104 {offsets = [0, 480], sizes = [8, 32], strides = [1, 1]} : vector<8x512xf32> to vector<8x32xf32>
    %121 = arith.mulf %105, %105 : vector<8x32xf32>
    %cst = arith.constant 0.000000e+00 : f32
    %122 = vector.broadcast %cst : f32 to vector<8x32xf32>
    %123 = arith.addf %122, %121 : vector<8x32xf32>
    %124 = arith.mulf %106, %106 : vector<8x32xf32>
    %125 = arith.addf %123, %124 : vector<8x32xf32>
    %126 = arith.mulf %107, %107 : vector<8x32xf32>
    %127 = arith.addf %125, %126 : vector<8x32xf32>
    %128 = arith.mulf %108, %108 : vector<8x32xf32>
    %129 = arith.addf %127, %128 : vector<8x32xf32>
    %130 = arith.mulf %109, %109 : vector<8x32xf32>
    %131 = arith.addf %129, %130 : vector<8x32xf32>
    %132 = arith.mulf %110, %110 : vector<8x32xf32>
    %133 = arith.addf %131, %132 : vector<8x32xf32>
    %134 = arith.mulf %111, %111 : vector<8x32xf32>
    %135 = arith.addf %133, %134 : vector<8x32xf32>
    %136 = arith.mulf %112, %112 : vector<8x32xf32>
    %137 = arith.addf %135, %136 : vector<8x32xf32>
    %138 = arith.mulf %113, %113 : vector<8x32xf32>
    %139 = arith.addf %137, %138 : vector<8x32xf32>
    %140 = arith.mulf %114, %114 : vector<8x32xf32>
    %141 = arith.addf %139, %140 : vector<8x32xf32>
    %142 = arith.mulf %115, %115 : vector<8x32xf32>
    %143 = arith.addf %141, %142 : vector<8x32xf32>
    %144 = arith.mulf %116, %116 : vector<8x32xf32>
    %145 = arith.addf %143, %144 : vector<8x32xf32>
    %146 = arith.mulf %117, %117 : vector<8x32xf32>
    %147 = arith.addf %145, %146 : vector<8x32xf32>
    %148 = arith.mulf %118, %118 : vector<8x32xf32>
    %149 = arith.addf %147, %148 : vector<8x32xf32>
    %150 = arith.mulf %119, %119 : vector<8x32xf32>
    %151 = arith.addf %149, %150 : vector<8x32xf32>
    %152 = arith.mulf %120, %120 : vector<8x32xf32>
    %153 = arith.addf %151, %152 : vector<8x32xf32>
    %154 = math.sqrt %153 : vector<8x32xf32>
    %c1_120 = arith.constant 1 : index
    %c0_121 = arith.constant 0 : index
    %c0_122 = arith.constant 0 : index
    %155 = vector.load %arg6[%c1_120, %c0_121, %c0_122] : memref<3x8x32xf32, #tpu.memory_space<vmem>>, vector<1x8x32xf32>
    %156 = vector.shape_cast %155 : vector<1x8x32xf32> to vector<8x32xf32>
    %157 = vector.shape_cast %154 : vector<8x32xf32> to vector<1x8x32xf32>
    tpu.vector_store %arg6[%c1_120, %c0_121, %c0_122], %157 {strides = array<i32>} : memref<3x8x32xf32, #tpu.memory_space<vmem>>, vector<1x8x32xf32>,
    %c0_i32_123 = arith.constant 0 : i32
    %c0_i32_124 = arith.constant 0 : i32
    %c0_i32_125 = arith.constant 0 : i32
    %158 = tpu.memref_slice %arg2[%0, %c0_i32_125] : memref<256x512xf32, #tpu.memory_space<any>> -> memref<1x128xf32, #tpu.memory_space<any>>
    %c0_i32_126 = arith.constant 0 : i32
    %c0_i32_127 = arith.constant 0 : i32
    %159 = tpu.memref_slice %arg7[%c0_i32_126, %c0_i32_127] : memref<8x128xf32, #tpu.memory_space<vmem>> -> memref<1x128xf32, #tpu.memory_space<vmem>>
    %160 = tpu.memref_slice %arg9[%c0_i32_123, %c0_i32_124] : memref<2x8x!tpu.dma_semaphore, #tpu.memory_space<semaphore_mem>> -> memref<1x1x!tpu.dma_semaphore, #tpu.memory_space<semaphore_mem>>
    %161 = tpu.memref_squeeze %160 : memref<1x1x!tpu.dma_semaphore, #tpu.memory_space<semaphore_mem>> -> memref<!tpu.dma_semaphore, #tpu.memory_space<semaphore_mem>>
    tpu.wait_dma2 semaphore(%161 : memref<!tpu.dma_semaphore, #tpu.memory_space<semaphore_mem>>) src(%158 : memref<1x128xf32, #tpu.memory_space<any>>) dst(%159 : memref<1x128xf32, #tpu.memory_space<vmem>>)
    %c0_i32_128 = arith.constant 0 : i32
    %c1_i32_129 = arith.constant 1 : i32
    %c0_i32_130 = arith.constant 0 : i32
    %162 = tpu.memref_slice %arg2[%2, %c0_i32_130] : memref<256x512xf32, #tpu.memory_space<any>> -> memref<1x128xf32, #tpu.memory_space<any>>
    %c1_i32_131 = arith.constant 1 : i32
    %c0_i32_132 = arith.constant 0 : i32
    %163 = tpu.memref_slice %arg7[%c1_i32_131, %c0_i32_132] : memref<8x128xf32, #tpu.memory_space<vmem>> -> memref<1x128xf32, #tpu.memory_space<vmem>>
    %164 = tpu.memref_slice %arg9[%c0_i32_128, %c1_i32_129] : memref<2x8x!tpu.dma_semaphore, #tpu.memory_space<semaphore_mem>> -> memref<1x1x!tpu.dma_semaphore, #tpu.memory_space<semaphore_mem>>
    %165 = tpu.memref_squeeze %164 : memref<1x1x!tpu.dma_semaphore, #tpu.memory_space<semaphore_mem>> -> memref<!tpu.dma_semaphore, #tpu.memory_space<semaphore_mem>>
    tpu.wait_dma2 semaphore(%165 : memref<!tpu.dma_semaphore, #tpu.memory_space<semaphore_mem>>) src(%162 : memref<1x128xf32, #tpu.memory_space<any>>) dst(%163 : memref<1x128xf32, #tpu.memory_space<vmem>>)
    %c0_i32_133 = arith.constant 0 : i32
    %c2_i32_134 = arith.constant 2 : i32
    %c0_i32_135 = arith.constant 0 : i32
    %166 = tpu.memref_slice %arg2[%4, %c0_i32_135] : memref<256x512xf32, #tpu.memory_space<any>> -> memref<1x128xf32, #tpu.memory_space<any>>
    %c2_i32_136 = arith.constant 2 : i32
    %c0_i32_137 = arith.constant 0 : i32
    %167 = tpu.memref_slice %arg7[%c2_i32_136, %c0_i32_137] : memref<8x128xf32, #tpu.memory_space<vmem>> -> memref<1x128xf32, #tpu.memory_space<vmem>>
    %168 = tpu.memref_slice %arg9[%c0_i32_133, %c2_i32_134] : memref<2x8x!tpu.dma_semaphore, #tpu.memory_space<semaphore_mem>> -> memref<1x1x!tpu.dma_semaphore, #tpu.memory_space<semaphore_mem>>
    %169 = tpu.memref_squeeze %168 : memref<1x1x!tpu.dma_semaphore, #tpu.memory_space<semaphore_mem>> -> memref<!tpu.dma_semaphore, #tpu.memory_space<semaphore_mem>>
    tpu.wait_dma2 semaphore(%169 : memref<!tpu.dma_semaphore, #tpu.memory_space<semaphore_mem>>) src(%166 : memref<1x128xf32, #tpu.memory_space<any>>) dst(%167 : memref<1x128xf32, #tpu.memory_space<vmem>>)
    %c0_i32_138 = arith.constant 0 : i32
    %c3_i32_139 = arith.constant 3 : i32
    %c0_i32_140 = arith.constant 0 : i32
    %170 = tpu.memref_slice %arg2[%6, %c0_i32_140] : memref<256x512xf32, #tpu.memory_space<any>> -> memref<1x128xf32, #tpu.memory_space<any>>
    %c3_i32_141 = arith.constant 3 : i32
    %c0_i32_142 = arith.constant 0 : i32
    %171 = tpu.memref_slice %arg7[%c3_i32_141, %c0_i32_142] : memref<8x128xf32, #tpu.memory_space<vmem>> -> memref<1x128xf32, #tpu.memory_space<vmem>>
    %172 = tpu.memref_slice %arg9[%c0_i32_138, %c3_i32_139] : memref<2x8x!tpu.dma_semaphore, #tpu.memory_space<semaphore_mem>> -> memref<1x1x!tpu.dma_semaphore, #tpu.memory_space<semaphore_mem>>
    %173 = tpu.memref_squeeze %172 : memref<1x1x!tpu.dma_semaphore, #tpu.memory_space<semaphore_mem>> -> memref<!tpu.dma_semaphore, #tpu.memory_space<semaphore_mem>>
    tpu.wait_dma2 semaphore(%173 : memref<!tpu.dma_semaphore, #tpu.memory_space<semaphore_mem>>) src(%170 : memref<1x128xf32, #tpu.memory_space<any>>) dst(%171 : memref<1x128xf32, #tpu.memory_space<vmem>>)
    %c0_i32_143 = arith.constant 0 : i32
    %c4_i32_144 = arith.constant 4 : i32
    %c0_i32_145 = arith.constant 0 : i32
    %174 = tpu.memref_slice %arg2[%8, %c0_i32_145] : memref<256x512xf32, #tpu.memory_space<any>> -> memref<1x128xf32, #tpu.memory_space<any>>
    %c4_i32_146 = arith.constant 4 : i32
    %c0_i32_147 = arith.constant 0 : i32
    %175 = tpu.memref_slice %arg7[%c4_i32_146, %c0_i32_147] : memref<8x128xf32, #tpu.memory_space<vmem>> -> memref<1x128xf32, #tpu.memory_space<vmem>>
    %176 = tpu.memref_slice %arg9[%c0_i32_143, %c4_i32_144] : memref<2x8x!tpu.dma_semaphore, #tpu.memory_space<semaphore_mem>> -> memref<1x1x!tpu.dma_semaphore, #tpu.memory_space<semaphore_mem>>
    %177 = tpu.memref_squeeze %176 : memref<1x1x!tpu.dma_semaphore, #tpu.memory_space<semaphore_mem>> -> memref<!tpu.dma_semaphore, #tpu.memory_space<semaphore_mem>>
    tpu.wait_dma2 semaphore(%177 : memref<!tpu.dma_semaphore, #tpu.memory_space<semaphore_mem>>) src(%174 : memref<1x128xf32, #tpu.memory_space<any>>) dst(%175 : memref<1x128xf32, #tpu.memory_space<vmem>>)
    %c0_i32_148 = arith.constant 0 : i32
    %c5_i32_149 = arith.constant 5 : i32
    %c0_i32_150 = arith.constant 0 : i32
    %178 = tpu.memref_slice %arg2[%10, %c0_i32_150] : memref<256x512xf32, #tpu.memory_space<any>> -> memref<1x128xf32, #tpu.memory_space<any>>
    %c5_i32_151 = arith.constant 5 : i32
    %c0_i32_152 = arith.constant 0 : i32
    %179 = tpu.memref_slice %arg7[%c5_i32_151, %c0_i32_152] : memref<8x128xf32, #tpu.memory_space<vmem>> -> memref<1x128xf32, #tpu.memory_space<vmem>>
    %180 = tpu.memref_slice %arg9[%c0_i32_148, %c5_i32_149] : memref<2x8x!tpu.dma_semaphore, #tpu.memory_space<semaphore_mem>> -> memref<1x1x!tpu.dma_semaphore, #tpu.memory_space<semaphore_mem>>
    %181 = tpu.memref_squeeze %180 : memref<1x1x!tpu.dma_semaphore, #tpu.memory_space<semaphore_mem>> -> memref<!tpu.dma_semaphore, #tpu.memory_space<semaphore_mem>>
    tpu.wait_dma2 semaphore(%181 : memref<!tpu.dma_semaphore, #tpu.memory_space<semaphore_mem>>) src(%178 : memref<1x128xf32, #tpu.memory_space<any>>) dst(%179 : memref<1x128xf32, #tpu.memory_space<vmem>>)
    %c0_i32_153 = arith.constant 0 : i32
    %c6_i32_154 = arith.constant 6 : i32
    %c0_i32_155 = arith.constant 0 : i32
    %182 = tpu.memref_slice %arg2[%12, %c0_i32_155] : memref<256x512xf32, #tpu.memory_space<any>> -> memref<1x128xf32, #tpu.memory_space<any>>
    %c6_i32_156 = arith.constant 6 : i32
    %c0_i32_157 = arith.constant 0 : i32
    %183 = tpu.memref_slice %arg7[%c6_i32_156, %c0_i32_157] : memref<8x128xf32, #tpu.memory_space<vmem>> -> memref<1x128xf32, #tpu.memory_space<vmem>>
    %184 = tpu.memref_slice %arg9[%c0_i32_153, %c6_i32_154] : memref<2x8x!tpu.dma_semaphore, #tpu.memory_space<semaphore_mem>> -> memref<1x1x!tpu.dma_semaphore, #tpu.memory_space<semaphore_mem>>
    %185 = tpu.memref_squeeze %184 : memref<1x1x!tpu.dma_semaphore, #tpu.memory_space<semaphore_mem>> -> memref<!tpu.dma_semaphore, #tpu.memory_space<semaphore_mem>>
    tpu.wait_dma2 semaphore(%185 : memref<!tpu.dma_semaphore, #tpu.memory_space<semaphore_mem>>) src(%182 : memref<1x128xf32, #tpu.memory_space<any>>) dst(%183 : memref<1x128xf32, #tpu.memory_space<vmem>>)
    %c0_i32_158 = arith.constant 0 : i32
    %c7_i32_159 = arith.constant 7 : i32
    %c0_i32_160 = arith.constant 0 : i32
    %186 = tpu.memref_slice %arg2[%14, %c0_i32_160] : memref<256x512xf32, #tpu.memory_space<any>> -> memref<1x128xf32, #tpu.memory_space<any>>
    %c7_i32_161 = arith.constant 7 : i32
    %c0_i32_162 = arith.constant 0 : i32
    %187 = tpu.memref_slice %arg7[%c7_i32_161, %c0_i32_162] : memref<8x128xf32, #tpu.memory_space<vmem>> -> memref<1x128xf32, #tpu.memory_space<vmem>>
    %188 = tpu.memref_slice %arg9[%c0_i32_158, %c7_i32_159] : memref<2x8x!tpu.dma_semaphore, #tpu.memory_space<semaphore_mem>> -> memref<1x1x!tpu.dma_semaphore, #tpu.memory_space<semaphore_mem>>
    %189 = tpu.memref_squeeze %188 : memref<1x1x!tpu.dma_semaphore, #tpu.memory_space<semaphore_mem>> -> memref<!tpu.dma_semaphore, #tpu.memory_space<semaphore_mem>>
    tpu.wait_dma2 semaphore(%189 : memref<!tpu.dma_semaphore, #tpu.memory_space<semaphore_mem>>) src(%186 : memref<1x128xf32, #tpu.memory_space<any>>) dst(%187 : memref<1x128xf32, #tpu.memory_space<vmem>>)
    %c0_163 = arith.constant 0 : index
    %c0_164 = arith.constant 0 : index
    %190 = vector.load %arg7[%c0_163, %c0_164] : memref<8x128xf32, #tpu.memory_space<vmem>>, vector<8x128xf32>
    %191 = vector.extract_strided_slice %190 {offsets = [0, 0], sizes = [8, 32], strides = [1, 1]} : vector<8x128xf32> to vector<8x32xf32>
    %192 = vector.extract_strided_slice %190 {offsets = [0, 32], sizes = [8, 32], strides = [1, 1]} : vector<8x128xf32> to vector<8x32xf32>
    %193 = vector.extract_strided_slice %190 {offsets = [0, 64], sizes = [8, 32], strides = [1, 1]} : vector<8x128xf32> to vector<8x32xf32>
    %194 = vector.extract_strided_slice %190 {offsets = [0, 96], sizes = [8, 32], strides = [1, 1]} : vector<8x128xf32> to vector<8x32xf32>
    %195 = arith.mulf %191, %191 : vector<8x32xf32>
    %196 = arith.mulf %192, %192 : vector<8x32xf32>
    %197 = arith.addf %195, %196 : vector<8x32xf32>
    %198 = arith.mulf %193, %193 : vector<8x32xf32>
    %199 = arith.addf %197, %198 : vector<8x32xf32>
    %200 = arith.mulf %194, %194 : vector<8x32xf32>
    %201 = arith.addf %199, %200 : vector<8x32xf32>
    %202 = math.sqrt %201 : vector<8x32xf32>
    %c0_165 = arith.constant 0 : index
    %c0_166 = arith.constant 0 : index
    %c0_167 = arith.constant 0 : index
    %203 = vector.load %arg6[%c0_165, %c0_166, %c0_167] : memref<3x8x32xf32, #tpu.memory_space<vmem>>, vector<1x8x32xf32>
    %204 = vector.shape_cast %203 : vector<1x8x32xf32> to vector<8x32xf32>
    %205 = vector.shape_cast %202 : vector<8x32xf32> to vector<1x8x32xf32>
    tpu.vector_store %arg6[%c0_165, %c0_166, %c0_167], %205 {strides = array<i32>} : memref<3x8x32xf32, #tpu.memory_space<vmem>>, vector<1x8x32xf32>,
    %206 = arith.mulf %191, %105 : vector<8x32xf32>
    %207 = arith.mulf %192, %106 : vector<8x32xf32>
    %208 = arith.subf %206, %207 : vector<8x32xf32>
    %209 = arith.mulf %193, %107 : vector<8x32xf32>
    %210 = arith.subf %208, %209 : vector<8x32xf32>
    %211 = arith.mulf %194, %108 : vector<8x32xf32>
    %212 = arith.subf %210, %211 : vector<8x32xf32>
    %213 = arith.mulf %191, %106 : vector<8x32xf32>
    %214 = arith.mulf %192, %105 : vector<8x32xf32>
    %215 = arith.addf %213, %214 : vector<8x32xf32>
    %216 = arith.mulf %193, %108 : vector<8x32xf32>
    %217 = arith.addf %215, %216 : vector<8x32xf32>
    %218 = arith.mulf %194, %107 : vector<8x32xf32>
    %219 = arith.subf %217, %218 : vector<8x32xf32>
    %220 = arith.mulf %191, %107 : vector<8x32xf32>
    %221 = arith.mulf %192, %108 : vector<8x32xf32>
    %222 = arith.subf %220, %221 : vector<8x32xf32>
    %223 = arith.mulf %193, %105 : vector<8x32xf32>
    %224 = arith.addf %222, %223 : vector<8x32xf32>
    %225 = arith.mulf %194, %106 : vector<8x32xf32>
    %226 = arith.addf %224, %225 : vector<8x32xf32>
    %227 = arith.mulf %191, %108 : vector<8x32xf32>
    %228 = arith.mulf %192, %107 : vector<8x32xf32>
    %229 = arith.addf %227, %228 : vector<8x32xf32>
    %230 = arith.mulf %193, %106 : vector<8x32xf32>
    %231 = arith.subf %229, %230 : vector<8x32xf32>
    %232 = arith.mulf %194, %105 : vector<8x32xf32>
    %233 = arith.addf %231, %232 : vector<8x32xf32>
    %234 = arith.addf %212, %109 : vector<8x32xf32>
    %235 = arith.addf %219, %110 : vector<8x32xf32>
    %236 = arith.addf %226, %111 : vector<8x32xf32>
    %237 = arith.addf %233, %112 : vector<8x32xf32>
    %238 = arith.mulf %191, %113 : vector<8x32xf32>
    %239 = arith.mulf %192, %114 : vector<8x32xf32>
    %240 = arith.subf %238, %239 : vector<8x32xf32>
    %241 = arith.mulf %193, %115 : vector<8x32xf32>
    %242 = arith.subf %240, %241 : vector<8x32xf32>
    %243 = arith.mulf %194, %116 : vector<8x32xf32>
    %244 = arith.subf %242, %243 : vector<8x32xf32>
    %245 = arith.mulf %191, %114 : vector<8x32xf32>
    %246 = arith.mulf %192, %113 : vector<8x32xf32>
    %247 = arith.addf %245, %246 : vector<8x32xf32>
    %248 = arith.mulf %193, %116 : vector<8x32xf32>
    %249 = arith.addf %247, %248 : vector<8x32xf32>
    %250 = arith.mulf %194, %115 : vector<8x32xf32>
    %251 = arith.subf %249, %250 : vector<8x32xf32>
    %252 = arith.mulf %191, %115 : vector<8x32xf32>
    %253 = arith.mulf %192, %116 : vector<8x32xf32>
    %254 = arith.subf %252, %253 : vector<8x32xf32>
    %255 = arith.mulf %193, %113 : vector<8x32xf32>
    %256 = arith.addf %254, %255 : vector<8x32xf32>
    %257 = arith.mulf %194, %114 : vector<8x32xf32>
    %258 = arith.addf %256, %257 : vector<8x32xf32>
    %259 = arith.mulf %191, %116 : vector<8x32xf32>
    %260 = arith.mulf %192, %115 : vector<8x32xf32>
    %261 = arith.addf %259, %260 : vector<8x32xf32>
    %262 = arith.mulf %193, %114 : vector<8x32xf32>
    %263 = arith.subf %261, %262 : vector<8x32xf32>
    %264 = arith.mulf %194, %113 : vector<8x32xf32>
    %265 = arith.addf %263, %264 : vector<8x32xf32>
    %266 = arith.addf %244, %117 : vector<8x32xf32>
    %267 = arith.addf %251, %118 : vector<8x32xf32>
    %268 = arith.addf %258, %119 : vector<8x32xf32>
    %269 = arith.addf %265, %120 : vector<8x32xf32>
    %270 = arith.mulf %266, %266 : vector<8x32xf32>
    %271 = arith.mulf %267, %267 : vector<8x32xf32>
    %272 = arith.addf %270, %271 : vector<8x32xf32>
    %273 = arith.mulf %268, %268 : vector<8x32xf32>
    %274 = arith.addf %272, %273 : vector<8x32xf32>
    %275 = arith.mulf %269, %269 : vector<8x32xf32>
    %276 = arith.addf %274, %275 : vector<8x32xf32>
    %277 = math.sqrt %276 : vector<8x32xf32>
    %cst_168 = arith.constant 1.000000e+00 : f32
    %278 = vector.broadcast %cst_168 : f32 to vector<8x32xf32>
    %279 = arith.divf %278, %277 : vector<8x32xf32>
    %280 = arith.mulf %234, %266 : vector<8x32xf32>
    %281 = arith.mulf %235, %267 : vector<8x32xf32>
    %282 = arith.addf %280, %281 : vector<8x32xf32>
    %283 = arith.mulf %236, %268 : vector<8x32xf32>
    %284 = arith.addf %282, %283 : vector<8x32xf32>
    %285 = arith.mulf %237, %269 : vector<8x32xf32>
    %286 = arith.addf %284, %285 : vector<8x32xf32>
    %287 = arith.mulf %286, %279 : vector<8x32xf32>
    %cst_169 = arith.constant 0.000000e+00 : f32
    %288 = vector.broadcast %cst_169 : f32 to vector<8x32xf32>
    %289 = arith.subf %288, %234 : vector<8x32xf32>
    %290 = arith.mulf %289, %267 : vector<8x32xf32>
    %291 = arith.mulf %235, %266 : vector<8x32xf32>
    %292 = arith.addf %290, %291 : vector<8x32xf32>
    %293 = arith.mulf %236, %269 : vector<8x32xf32>
    %294 = arith.subf %292, %293 : vector<8x32xf32>
    %295 = arith.mulf %237, %268 : vector<8x32xf32>
    %296 = arith.addf %294, %295 : vector<8x32xf32>
    %297 = arith.mulf %296, %279 : vector<8x32xf32>
    %cst_170 = arith.constant 0.000000e+00 : f32
    %298 = vector.broadcast %cst_170 : f32 to vector<8x32xf32>
    %299 = arith.subf %298, %234 : vector<8x32xf32>
    %300 = arith.mulf %299, %268 : vector<8x32xf32>
    %301 = arith.mulf %235, %269 : vector<8x32xf32>
    %302 = arith.addf %300, %301 : vector<8x32xf32>
    %303 = arith.mulf %236, %266 : vector<8x32xf32>
    %304 = arith.addf %302, %303 : vector<8x32xf32>
    %305 = arith.mulf %237, %267 : vector<8x32xf32>
    %306 = arith.subf %304, %305 : vector<8x32xf32>
    %307 = arith.mulf %306, %279 : vector<8x32xf32>
    %cst_171 = arith.constant 0.000000e+00 : f32
    %308 = vector.broadcast %cst_171 : f32 to vector<8x32xf32>
    %309 = arith.subf %308, %234 : vector<8x32xf32>
    %310 = arith.mulf %309, %269 : vector<8x32xf32>
    %311 = arith.mulf %235, %268 : vector<8x32xf32>
    %312 = arith.subf %310, %311 : vector<8x32xf32>
    %313 = arith.mulf %236, %267 : vector<8x32xf32>
    %314 = arith.addf %312, %313 : vector<8x32xf32>
    %315 = arith.mulf %237, %266 : vector<8x32xf32>
    %316 = arith.addf %314, %315 : vector<8x32xf32>
    %317 = arith.mulf %316, %279 : vector<8x32xf32>
    %318 = tpu.concatenate %287, %297, %307, %317 in 1 : vector<8x32xf32>, vector<8x32xf32>, vector<8x32xf32>, vector<8x32xf32> -> vector<8x128xf32>
    %c0_172 = arith.constant 0 : index
    %c0_173 = arith.constant 0 : index
    %319 = vector.load %arg4[%c0_172, %c0_173] : memref<128x256xf32, #tpu.memory_space<vmem>>, vector<128x256xf32>
    %cst_174 = arith.constant dense<0.000000e+00> : vector<8x256xf32>
    %320 = tpu.matmul %318, %319, %cst_174 {dimension_numbers = #tpu.dot_dimension_numbers<[1], [0], [0], [1], [0, 0, 1, 1], [], []>} : vector<8x128xf32>, vector<128x256xf32>, vector<8x256xf32> -> vector<8x256xf32>
    %c0_175 = arith.constant 0 : index
    %c0_176 = arith.constant 0 : index
    %321 = vector.load %arg5[%c0_175, %c0_176] : memref<8x256xf32, #tpu.memory_space<vmem>>, vector<8x256xf32>
    tpu.vector_store %arg5[%c0_175, %c0_176], %320 {strides = array<i32>} : memref<8x256xf32, #tpu.memory_space<vmem>>, vector<8x256xf32>,
    %c1_i32_177 = arith.constant 1 : i32
    %c0_i32_178 = arith.constant 0 : i32
    %c0_i32_179 = arith.constant 0 : i32
    %322 = tpu.memref_slice %arg2[%1, %c0_i32_179] : memref<256x512xf32, #tpu.memory_space<any>> -> memref<1x128xf32, #tpu.memory_space<any>>
    %c0_i32_180 = arith.constant 0 : i32
    %c0_i32_181 = arith.constant 0 : i32
    %323 = tpu.memref_slice %arg8[%c0_i32_180, %c0_i32_181] : memref<8x128xf32, #tpu.memory_space<vmem>> -> memref<1x128xf32, #tpu.memory_space<vmem>>
    %324 = tpu.memref_slice %arg9[%c1_i32_177, %c0_i32_178] : memref<2x8x!tpu.dma_semaphore, #tpu.memory_space<semaphore_mem>> -> memref<1x1x!tpu.dma_semaphore, #tpu.memory_space<semaphore_mem>>
    %325 = tpu.memref_squeeze %324 : memref<1x1x!tpu.dma_semaphore, #tpu.memory_space<semaphore_mem>> -> memref<!tpu.dma_semaphore, #tpu.memory_space<semaphore_mem>>
    tpu.wait_dma2 semaphore(%325 : memref<!tpu.dma_semaphore, #tpu.memory_space<semaphore_mem>>) src(%322 : memref<1x128xf32, #tpu.memory_space<any>>) dst(%323 : memref<1x128xf32, #tpu.memory_space<vmem>>)
    %c1_i32_182 = arith.constant 1 : i32
    %c1_i32_183 = arith.constant 1 : i32
    %c0_i32_184 = arith.constant 0 : i32
    %326 = tpu.memref_slice %arg2[%3, %c0_i32_184] : memref<256x512xf32, #tpu.memory_space<any>> -> memref<1x128xf32, #tpu.memory_space<any>>
    %c1_i32_185 = arith.constant 1 : i32
    %c0_i32_186 = arith.constant 0 : i32
    %327 = tpu.memref_slice %arg8[%c1_i32_185, %c0_i32_186] : memref<8x128xf32, #tpu.memory_space<vmem>> -> memref<1x128xf32, #tpu.memory_space<vmem>>
    %328 = tpu.memref_slice %arg9[%c1_i32_182, %c1_i32_183] : memref<2x8x!tpu.dma_semaphore, #tpu.memory_space<semaphore_mem>> -> memref<1x1x!tpu.dma_semaphore, #tpu.memory_space<semaphore_mem>>
    %329 = tpu.memref_squeeze %328 : memref<1x1x!tpu.dma_semaphore, #tpu.memory_space<semaphore_mem>> -> memref<!tpu.dma_semaphore, #tpu.memory_space<semaphore_mem>>
    tpu.wait_dma2 semaphore(%329 : memref<!tpu.dma_semaphore, #tpu.memory_space<semaphore_mem>>) src(%326 : memref<1x128xf32, #tpu.memory_space<any>>) dst(%327 : memref<1x128xf32, #tpu.memory_space<vmem>>)
    %c1_i32_187 = arith.constant 1 : i32
    %c2_i32_188 = arith.constant 2 : i32
    %c0_i32_189 = arith.constant 0 : i32
    %330 = tpu.memref_slice %arg2[%5, %c0_i32_189] : memref<256x512xf32, #tpu.memory_space<any>> -> memref<1x128xf32, #tpu.memory_space<any>>
    %c2_i32_190 = arith.constant 2 : i32
    %c0_i32_191 = arith.constant 0 : i32
    %331 = tpu.memref_slice %arg8[%c2_i32_190, %c0_i32_191] : memref<8x128xf32, #tpu.memory_space<vmem>> -> memref<1x128xf32, #tpu.memory_space<vmem>>
    %332 = tpu.memref_slice %arg9[%c1_i32_187, %c2_i32_188] : memref<2x8x!tpu.dma_semaphore, #tpu.memory_space<semaphore_mem>> -> memref<1x1x!tpu.dma_semaphore, #tpu.memory_space<semaphore_mem>>
    %333 = tpu.memref_squeeze %332 : memref<1x1x!tpu.dma_semaphore, #tpu.memory_space<semaphore_mem>> -> memref<!tpu.dma_semaphore, #tpu.memory_space<semaphore_mem>>
    tpu.wait_dma2 semaphore(%333 : memref<!tpu.dma_semaphore, #tpu.memory_space<semaphore_mem>>) src(%330 : memref<1x128xf32, #tpu.memory_space<any>>) dst(%331 : memref<1x128xf32, #tpu.memory_space<vmem>>)
    %c1_i32_192 = arith.constant 1 : i32
    %c3_i32_193 = arith.constant 3 : i32
    %c0_i32_194 = arith.constant 0 : i32
    %334 = tpu.memref_slice %arg2[%7, %c0_i32_194] : memref<256x512xf32, #tpu.memory_space<any>> -> memref<1x128xf32, #tpu.memory_space<any>>
    %c3_i32_195 = arith.constant 3 : i32
    %c0_i32_196 = arith.constant 0 : i32
    %335 = tpu.memref_slice %arg8[%c3_i32_195, %c0_i32_196] : memref<8x128xf32, #tpu.memory_space<vmem>> -> memref<1x128xf32, #tpu.memory_space<vmem>>
    %336 = tpu.memref_slice %arg9[%c1_i32_192, %c3_i32_193] : memref<2x8x!tpu.dma_semaphore, #tpu.memory_space<semaphore_mem>> -> memref<1x1x!tpu.dma_semaphore, #tpu.memory_space<semaphore_mem>>
    %337 = tpu.memref_squeeze %336 : memref<1x1x!tpu.dma_semaphore, #tpu.memory_space<semaphore_mem>> -> memref<!tpu.dma_semaphore, #tpu.memory_space<semaphore_mem>>
    tpu.wait_dma2 semaphore(%337 : memref<!tpu.dma_semaphore, #tpu.memory_space<semaphore_mem>>) src(%334 : memref<1x128xf32, #tpu.memory_space<any>>) dst(%335 : memref<1x128xf32, #tpu.memory_space<vmem>>)
    %c1_i32_197 = arith.constant 1 : i32
    %c4_i32_198 = arith.constant 4 : i32
    %c0_i32_199 = arith.constant 0 : i32
    %338 = tpu.memref_slice %arg2[%9, %c0_i32_199] : memref<256x512xf32, #tpu.memory_space<any>> -> memref<1x128xf32, #tpu.memory_space<any>>
    %c4_i32_200 = arith.constant 4 : i32
    %c0_i32_201 = arith.constant 0 : i32
    %339 = tpu.memref_slice %arg8[%c4_i32_200, %c0_i32_201] : memref<8x128xf32, #tpu.memory_space<vmem>> -> memref<1x128xf32, #tpu.memory_space<vmem>>
    %340 = tpu.memref_slice %arg9[%c1_i32_197, %c4_i32_198] : memref<2x8x!tpu.dma_semaphore, #tpu.memory_space<semaphore_mem>> -> memref<1x1x!tpu.dma_semaphore, #tpu.memory_space<semaphore_mem>>
    %341 = tpu.memref_squeeze %340 : memref<1x1x!tpu.dma_semaphore, #tpu.memory_space<semaphore_mem>> -> memref<!tpu.dma_semaphore, #tpu.memory_space<semaphore_mem>>
    tpu.wait_dma2 semaphore(%341 : memref<!tpu.dma_semaphore, #tpu.memory_space<semaphore_mem>>) src(%338 : memref<1x128xf32, #tpu.memory_space<any>>) dst(%339 : memref<1x128xf32, #tpu.memory_space<vmem>>)
    %c1_i32_202 = arith.constant 1 : i32
    %c5_i32_203 = arith.constant 5 : i32
    %c0_i32_204 = arith.constant 0 : i32
    %342 = tpu.memref_slice %arg2[%11, %c0_i32_204] : memref<256x512xf32, #tpu.memory_space<any>> -> memref<1x128xf32, #tpu.memory_space<any>>
    %c5_i32_205 = arith.constant 5 : i32
    %c0_i32_206 = arith.constant 0 : i32
    %343 = tpu.memref_slice %arg8[%c5_i32_205, %c0_i32_206] : memref<8x128xf32, #tpu.memory_space<vmem>> -> memref<1x128xf32, #tpu.memory_space<vmem>>
    %344 = tpu.memref_slice %arg9[%c1_i32_202, %c5_i32_203] : memref<2x8x!tpu.dma_semaphore, #tpu.memory_space<semaphore_mem>> -> memref<1x1x!tpu.dma_semaphore, #tpu.memory_space<semaphore_mem>>
    %345 = tpu.memref_squeeze %344 : memref<1x1x!tpu.dma_semaphore, #tpu.memory_space<semaphore_mem>> -> memref<!tpu.dma_semaphore, #tpu.memory_space<semaphore_mem>>
    tpu.wait_dma2 semaphore(%345 : memref<!tpu.dma_semaphore, #tpu.memory_space<semaphore_mem>>) src(%342 : memref<1x128xf32, #tpu.memory_space<any>>) dst(%343 : memref<1x128xf32, #tpu.memory_space<vmem>>)
    %c1_i32_207 = arith.constant 1 : i32
    %c6_i32_208 = arith.constant 6 : i32
    %c0_i32_209 = arith.constant 0 : i32
    %346 = tpu.memref_slice %arg2[%13, %c0_i32_209] : memref<256x512xf32, #tpu.memory_space<any>> -> memref<1x128xf32, #tpu.memory_space<any>>
    %c6_i32_210 = arith.constant 6 : i32
    %c0_i32_211 = arith.constant 0 : i32
    %347 = tpu.memref_slice %arg8[%c6_i32_210, %c0_i32_211] : memref<8x128xf32, #tpu.memory_space<vmem>> -> memref<1x128xf32, #tpu.memory_space<vmem>>
    %348 = tpu.memref_slice %arg9[%c1_i32_207, %c6_i32_208] : memref<2x8x!tpu.dma_semaphore, #tpu.memory_space<semaphore_mem>> -> memref<1x1x!tpu.dma_semaphore, #tpu.memory_space<semaphore_mem>>
    %349 = tpu.memref_squeeze %348 : memref<1x1x!tpu.dma_semaphore, #tpu.memory_space<semaphore_mem>> -> memref<!tpu.dma_semaphore, #tpu.memory_space<semaphore_mem>>
    tpu.wait_dma2 semaphore(%349 : memref<!tpu.dma_semaphore, #tpu.memory_space<semaphore_mem>>) src(%346 : memref<1x128xf32, #tpu.memory_space<any>>) dst(%347 : memref<1x128xf32, #tpu.memory_space<vmem>>)
    %c1_i32_212 = arith.constant 1 : i32
    %c7_i32_213 = arith.constant 7 : i32
    %c0_i32_214 = arith.constant 0 : i32
    %350 = tpu.memref_slice %arg2[%15, %c0_i32_214] : memref<256x512xf32, #tpu.memory_space<any>> -> memref<1x128xf32, #tpu.memory_space<any>>
    %c7_i32_215 = arith.constant 7 : i32
    %c0_i32_216 = arith.constant 0 : i32
    %351 = tpu.memref_slice %arg8[%c7_i32_215, %c0_i32_216] : memref<8x128xf32, #tpu.memory_space<vmem>> -> memref<1x128xf32, #tpu.memory_space<vmem>>
    %352 = tpu.memref_slice %arg9[%c1_i32_212, %c7_i32_213] : memref<2x8x!tpu.dma_semaphore, #tpu.memory_space<semaphore_mem>> -> memref<1x1x!tpu.dma_semaphore, #tpu.memory_space<semaphore_mem>>
    %353 = tpu.memref_squeeze %352 : memref<1x1x!tpu.dma_semaphore, #tpu.memory_space<semaphore_mem>> -> memref<!tpu.dma_semaphore, #tpu.memory_space<semaphore_mem>>
    tpu.wait_dma2 semaphore(%353 : memref<!tpu.dma_semaphore, #tpu.memory_space<semaphore_mem>>) src(%350 : memref<1x128xf32, #tpu.memory_space<any>>) dst(%351 : memref<1x128xf32, #tpu.memory_space<vmem>>)
    %c0_217 = arith.constant 0 : index
    %c0_218 = arith.constant 0 : index
    %354 = vector.load %arg8[%c0_217, %c0_218] : memref<8x128xf32, #tpu.memory_space<vmem>>, vector<8x128xf32>
    %355 = vector.extract_strided_slice %354 {offsets = [0, 0], sizes = [8, 32], strides = [1, 1]} : vector<8x128xf32> to vector<8x32xf32>
    %356 = vector.extract_strided_slice %354 {offsets = [0, 32], sizes = [8, 32], strides = [1, 1]} : vector<8x128xf32> to vector<8x32xf32>
    %357 = vector.extract_strided_slice %354 {offsets = [0, 64], sizes = [8, 32], strides = [1, 1]} : vector<8x128xf32> to vector<8x32xf32>
    %358 = vector.extract_strided_slice %354 {offsets = [0, 96], sizes = [8, 32], strides = [1, 1]} : vector<8x128xf32> to vector<8x32xf32>
    %359 = arith.mulf %355, %355 : vector<8x32xf32>
    %360 = arith.mulf %356, %356 : vector<8x32xf32>
    %361 = arith.addf %359, %360 : vector<8x32xf32>
    %362 = arith.mulf %357, %357 : vector<8x32xf32>
    %363 = arith.addf %361, %362 : vector<8x32xf32>
    %364 = arith.mulf %358, %358 : vector<8x32xf32>
    %365 = arith.addf %363, %364 : vector<8x32xf32>
    %366 = math.sqrt %365 : vector<8x32xf32>
    %c2_219 = arith.constant 2 : index
    %c0_220 = arith.constant 0 : index
    %c0_221 = arith.constant 0 : index
    %367 = vector.load %arg6[%c2_219, %c0_220, %c0_221] : memref<3x8x32xf32, #tpu.memory_space<vmem>>, vector<1x8x32xf32>
    %368 = vector.shape_cast %367 : vector<1x8x32xf32> to vector<8x32xf32>
    %369 = vector.shape_cast %366 : vector<8x32xf32> to vector<1x8x32xf32>
    tpu.vector_store %arg6[%c2_219, %c0_220, %c0_221], %369 {strides = array<i32>} : memref<3x8x32xf32, #tpu.memory_space<vmem>>, vector<1x8x32xf32>,
    return
  }
  func.func @transform_1(%arg0: i32, %arg1: memref<8x3xi32, #tpu.memory_space<smem>>) -> (i32, i32) {
    %c0_i32 = arith.constant 0 : i32
    %c0_i32_0 = arith.constant 0 : i32
    %c0_i32_1 = arith.constant 0 : i32
    return %c0_i32, %c0_i32_0 : i32, i32
  }
  func.func @transform_2(%arg0: i32, %arg1: memref<8x3xi32, #tpu.memory_space<smem>>) -> (i32, i32) {
    %c0_i32 = arith.constant 0 : i32
    %c0_i32_0 = arith.constant 0 : i32
    %c0_i32_1 = arith.constant 0 : i32
    return %c0_i32, %c0_i32_0 : i32, i32
  }
  func.func @transform_3(%arg0: i32, %arg1: memref<8x3xi32, #tpu.memory_space<smem>>) -> (i32, i32) {
    %c0_i32 = arith.constant 0 : i32
    %c0_i32_0 = arith.constant 0 : i32
    %c0_i32_1 = arith.constant 0 : i32
    return %c0_i32, %c0_i32_0 : i32, i32
  }
  func.func @transform_4(%arg0: i32, %arg1: memref<8x3xi32, #tpu.memory_space<smem>>) -> (i32, i32, i32) {
    %c0_i32 = arith.constant 0 : i32
    %c0_i32_0 = arith.constant 0 : i32
    %c0_i32_1 = arith.constant 0 : i32
    %c0_i32_2 = arith.constant 0 : i32
    return %c0_i32, %c0_i32_0, %c0_i32_1 : i32, i32, i32
  }
}

</mosaic_0001>

<bundles_post_ra>
// kernel: mobius_quate_forward.1
= control target key start
LH: loop header
LB: loop body
LE: loop exit
PB: predicated region body
PF: predicated region fallthrough
CT: control target
= control target key end

     0   :  { %s1889_s21 = smov [#allocation6]   ;;  %s2409_s0 = inlined_call_operand.vmem [shape: s32[8,3], index: 0, kind: input, shape index: {}]   ;;  %s2410_s1 = inlined_call_operand.hbm [shape: f32[256,512], index: 1, kind: input, shape index: {}]   ;;  %s2411_s2 = inlined_call_operand.hbm [shape: f32[16,512], index: 2, kind: input, shape index: {}]   ;;  %s2412_s3 = inlined_call_operand.hbm [shape: f32[128,256], index: 3, kind: input, shape index: {}]   ;;  %s2413_s4 = inlined_call_operand.hbm [shape: f32[8,256], index: 4, kind: output, shape index: {0}]   ;;  %s2414_s5 = inlined_call_operand.vmem [shape: f32[3,8,32], index: 5, kind: output, shape index: {1}]  }
   0x1   :  { %s12_s20 = sshll.u32 %s2409_s0, 4  ;;  %s13_s20 = int_to_ptr.vmem [resolvable:$true] %s12_s20 }
   0x2   :  { %15 = dma.vmem_to_smem %s13_s20, 128, %s1889_s21, [#allocation5] }
   0x3   :  { %1849 = dma.done.wait [#allocation5], 128 }
   0x4   :  { %1850 = vsyncadd [#allocation5], 4294967168 }
   0x5   :  { %18 = sfence }
   0x6   :  { %19 = vsyncpa [#allocation8], 0 }
   0x7   :  { %20 = vsyncpa [#allocation11], 0 }
   0x8   :  { %21 = vsyncpa [#allocation9], 0  ;;  %s26_s24 = sshll.u32 %s2411_s2, 4  ;;  %s1890_s25 = smov [#allocation7]   ;;  %s27_s24 = int_to_ptr.hbm [resolvable:$true] %s26_s24 }
   0x9   :  { %s28_s26 = sshll.u32 %s1890_s25, 4  ;;  %s39_s0 = sshll.u32 %s2412_s3, 4  ;;  %s29_s26 = int_to_ptr.vmem [resolvable:$true] %s28_s26  ;;  %s40_s0 = int_to_ptr.hbm [resolvable:$true] %s39_s0 }
   0xa   :  { %s1891_s29 = smov 512   ;;  %s1892_s30 = smov 32  }
   0xb   :  { %34 = dma.hbm_to_vmem [thread:$0]  %s27_s24, 1024, %s29_s26, [#allocation8], %s1891_s29, %s1891_s29, %s1892_s30  }
   0xc   :  { %s1893_s6 = smov [#allocation10]   ;;  %s1894_s8 = smov 256  }
   0xd   :  { %s41_s7 = sshll.u32 %s1893_s6, 4  ;;  %s1895_s9 = smov 16   ;;  %s42_s7 = int_to_ptr.vmem [resolvable:$true] %s41_s7 }
   0xe   :  { %47 = dma.hbm_to_vmem [thread:$0]  %s40_s0, 4096, %s42_s7, [#allocation11], %s1894_s8, %s1894_s8, %s1895_s9  }
   0xf   :  { %1851 = dma.done.wait [#allocation8], 1024  }
  0x10   :  { %1852 = vsyncadd [#allocation8], 4294966272 }
  0x11   :  { %1853 = dma.done.wait [#allocation11], 4096  }
  0x12   :  { %1854 = vsyncadd [#allocation11], 4294963200  ;;  %s1295_s2 = sld [smem:[#allocation6 + $0x1]]  ;;  %vm541_vm0 = vcmask 1040384   ;;  %vm546_vm1 = vcmask 1041408   ;;  %vm551_vm2 = vcmask 1042432  }
  0x13   :  { %s1298_s10 = sld [smem:[#allocation6 + $0x81]]  ;;  %vm556_vm3 = vcmask 1043456   ;;  %vm561_vm4 = vcmask 1044480   ;;  %vm566_vm5 = vcmask 1045504   ;;  %vm571_vm6 = vcmask 1046528  }
  0x14   :  { %s1301_s11 = sld [smem:[#allocation6 + $0x101]] }
  0x15   :  { %s1955_s12 = sld [smem:[#allocation6 + $0x181]] }
  0x16   :  { %s1957_s3 = sld [smem:[#allocation6 + $0x201]] }
  0x17   :  { %s1959_s13 = sld [smem:[#allocation6 + $0x281]] }
  0x18   :  { %s390_s14 = sshra.s32 %s1295_s2, 3  ;;  %s393_s15 = sand.u32 7, %s1295_s2 }
  0x19   :  { %s1337_s16 = sshll.u32 %s390_s14, 5  ;;  %s400_s17 = sshra.s32 %s1298_s10, 3 }
  0x1a   :  { %s396_s18 = sadd.s32 %s1337_s16, %s393_s15  ;;  %s403_s19 = sand.u32 7, %s1298_s10 }
  0x1b   :  { %s1338_s20 = sshll.u32 %s400_s17, 5  ;;  %s410_s22 = sshra.s32 %s1301_s11, 3 }
  0x1c   :  { %s406_s21 = sadd.s32 %s1338_s20, %s403_s19  ;;  %s397_s23 = scalar_lea.vmem [#allocation7], %s396_s18 }
  0x1d   :  { %v1961_v0 = vld [vmem:[%s397_s23] ss:$8 sm:$0xf]  ;;  %s413_s24 = sand.u32 7, %s1301_s11  ;;  %s407_s25 = scalar_lea.vmem [#allocation7], %s406_s21 }
  0x1e   :  { %v1963_v1 = vld [vmem:[%s407_s25] ss:$8 sm:$0xf]  ;;  %s1339_s26 = sshll.u32 %s410_s22, 5  ;;  %s420_s27 = sshra.s32 %s1955_s12, 3  ;;  %v470_v2 = vperm.slane %v1961_v0, 0 }
  0x1f   :  { %s416_s28 = sadd.s32 %s1339_s26, %s413_s24  ;;  %s423_s0 = sand.u32 7, %s1955_s12  ;;  %v479_v3 = vperm.slane %v1963_v1, 0  ;;  %v471_v4 = vperm.slane %v1961_v0, 1  ;;  %v480_v5 = vperm.slane %v1963_v1, 1  ;;  %v472_v22 = vperm.slane %v1961_v0, 2 }
  0x20   :  { %s1340_s29 = sshll.u32 %s420_s27, 5  ;;  %s417_s6 = scalar_lea.vmem [#allocation7], %s416_s28  ;;  %v481_v23 = vperm.slane %v1963_v1, 2  ;;  %v473_v38 = vperm.slane %v1961_v0, 3  ;;  %v482_v39 = vperm.slane %v1963_v1, 3 }
  0x21   :  { %v1971_v6 = vld [vmem:[%s417_s6] ss:$8 sm:$0xf]  ;;  %s426_s7 = sadd.s32 %s1340_s29, %s423_s0  ;;  %s430_s8 = sshra.s32 %s1957_s3, 3  ;;  %v542_v10 = vsel %vm541_vm0, %v470_v2, %v479_v3  ;;  %v543_v11 = vsel %vm541_vm0, %v471_v4, %v480_v5 }
  0x22   :  { %s433_s9 = sand.u32 7, %s1957_s3  ;;  %v488_v7 = vperm.slane %v1971_v6, 0  ;;  %s427_s2 = scalar_lea.vmem [#allocation7], %s426_s7  ;;  %v489_v9 = vperm.slane %v1971_v6, 1  ;;  %v490_v28 = vperm.slane %v1971_v6, 2  ;;  %v544_v29 = vsel %vm541_vm0, %v472_v22, %v481_v23 }
  0x23   :  { %v1976_v8 = vld [vmem:[%s427_s2] ss:$8 sm:$0xf]  ;;  %s1341_s10 = sshll.u32 %s430_s8, 5  ;;  %s440_s11 = sshra.s32 %s1959_s13, 3  ;;  %v491_v49 = vperm.slane %v1971_v6, 3  ;;  %v545_v52 = vsel %vm541_vm0, %v473_v38, %v482_v39 }
  0x24   :  { %s436_s12 = sadd.s32 %s1341_s10, %s433_s9  ;;  %s443_s14 = sand.u32 7, %s1959_s13  ;;  %v497_v12 = vperm.slane %v1976_v8, 0  ;;  %v498_v14 = vperm.slane %v1976_v8, 1  ;;  %v547_v15 = vsel %vm546_vm1, %v542_v10, %v488_v7  ;;  %v548_v16 = vsel %vm546_vm1, %v543_v11, %v489_v9 }
  0x25   :  { %s1342_s15 = sshll.u32 %s440_s11, 5  ;;  %s437_s3 = scalar_lea.vmem [#allocation7], %s436_s12  ;;  %v499_v35 = vperm.slane %v1976_v8, 2  ;;  %v549_v37 = vsel %vm546_vm1, %v544_v29, %v490_v28  ;;  %v500_v54 = vperm.slane %v1976_v8, 3  ;;  %v550_v56 = vsel %vm546_vm1, %v545_v52, %v491_v49 }
  0x26   :  { %v1984_v13 = vld [vmem:[%s437_s3] ss:$8 sm:$0xf]  ;;  %s446_s16 = sadd.s32 %s1342_s15, %s443_s14  ;;  %s1313_s17 = sld [smem:[#allocation6 + $0x301]]  ;;  %v552_v20 = vsel %vm551_vm2, %v547_v15, %v497_v12  ;;  %v553_v21 = vsel %vm551_vm2, %v548_v16, %v498_v14 }
  0x27   :  { %s1987_s18 = sld [smem:[#allocation6 + $0x381]]  ;;  %s447_s13 = scalar_lea.vmem [#allocation7], %s446_s16  ;;  %v506_v18 = vperm.slane %v1984_v13, 0  ;;  %v507_v19 = vperm.slane %v1984_v13, 1  ;;  %v508_v44 = vperm.slane %v1984_v13, 2  ;;  %v554_v47 = vsel %vm551_vm2, %v549_v37, %v499_v35 }
  0x28   :  { %v1991_v17 = vld [vmem:[%s447_s13] ss:$8 sm:$0xf]  ;;  %s1896_s0 = smov 96   ;;  %s1897_s29 = smov 64   ;;  %v509_v58 = vperm.slane %v1984_v13, 3  ;;  %v555_v60 = vsel %vm551_vm2, %v550_v56, %v500_v54 }
  0x29   :  { %v515_v24 = vperm.slane %v1991_v17, 0  ;;  %v516_v25 = vperm.slane %v1991_v17, 1  ;;  %v557_v26 = vsel %vm556_vm3, %v552_v20, %v506_v18  ;;  %v558_v27 = vsel %vm556_vm3, %v553_v21, %v507_v19  ;;  %s56_s6 = sld [smem:[#allocation6]] }
  0x2a   :  { %v517_v51 = vperm.slane %v1991_v17, 2  ;;  %v559_v53 = vsel %vm556_vm3, %v554_v47, %v508_v44  ;;  %v518_v62 = vperm.slane %v1991_v17, 3  ;;  %v560_v63 = vsel %vm556_vm3, %v555_v60, %v509_v58  ;;  %s2073_s7 = sld [smem:[#allocation6 + $0x80]] }
  0x2b   :  { %v562_v31 = vsel %vm561_vm4, %v557_v26, %v515_v24  ;;  %v563_v32 = vsel %vm561_vm4, %v558_v27, %v516_v25  ;;  %s2075_s8 = sld [smem:[#allocation6 + $0x100]] }
  0x2c   :  { %s450_s19 = sshra.s32 %s1313_s17, 3  ;;  %s453_s20 = sand.u32 7, %s1313_s17  ;;  %v564_v57 = vsel %vm561_vm4, %v559_v53, %v517_v51  ;;  %v565_v2 = vsel %vm561_vm4, %v560_v63, %v518_v62 }
  0x2d   :  { %s1343_s21 = sshll.u32 %s450_s19, 5  ;;  %s460_s22 = sshra.s32 %s1987_s18, 3 }
  0x2e   :  { %s456_s23 = sadd.s32 %s1343_s21, %s453_s20  ;;  %s463_s24 = sand.u32 7, %s1987_s18 }
  0x2f   :  { %s1344_s25 = sshll.u32 %s460_s22, 5  ;;  %s457_s26 = scalar_lea.vmem [#allocation7], %s456_s23 }
  0x30   :  { %v458_v30 = vld [vmem:[%s457_s26] ss:$8 sm:$0xf]  ;;  %s466_s27 = sadd.s32 %s1344_s25, %s463_s24  ;;  %s2081_s9 = sld [smem:[#allocation6 + $0x180]] }
  0x31   :  { %v524_v33 = vperm.slane %v458_v30, 0  ;;  %v525_v34 = vperm.slane %v458_v30, 1  ;;  %s467_s28 = scalar_lea.vmem [#allocation7], %s466_s27  ;;  %v526_v55 = vperm.slane %v458_v30, 2  ;;  %v527_v1 = vperm.slane %v458_v30, 3  ;;  %s2083_s2 = sld [smem:[#allocation6 + $0x200]] }
  0x32   :  { %v468_v36 = vld [vmem:[%s467_s28] ss:$8 sm:$0xf]  ;;  %s2085_s10 = sld [smem:[#allocation6 + $0x280]]  ;;  %s72_s11 = sshrl.u32 %s56_s6, 3 }
  0x33   :  { %v533_v40 = vperm.slane %v468_v36, 0  ;;  %v567_v41 = vsel %vm566_vm5, %v562_v31, %v524_v33  ;;  %v534_v42 = vperm.slane %v468_v36, 1  ;;  %v568_v43 = vsel %vm566_vm5, %v563_v32, %v525_v34  ;;  %s2087_s12 = sld [smem:[#allocation6 + $0x300]]  ;;  %s73_s14 = sand.u32 7, %s56_s6  }
  0x34   :  { %v535_v59 = vperm.slane %v468_v36, 2  ;;  %v569_v61 = vsel %vm566_vm5, %v564_v57, %v526_v55  ;;  %v536_v4 = vperm.slane %v468_v36, 3  ;;  %v570_v5 = vsel %vm566_vm5, %v565_v2, %v527_v1  ;;  %s1279_s15 = sshll.u32 %s72_s11, 5  ;;  %s90_s16 = sshrl.u32 %s2073_s7, 3 }
  0x35   :  { %v2017_v45 = vsel %vm571_vm6, %v567_v41, %v533_v40  ;;  %v2020_v46 = vsel %vm571_vm6, %v568_v43, %v534_v42  ;;  %s75_s3 = sadd.s32 %s1279_s15, %s73_s14  ;;  %s1898_s20 = smov [#allocation2]  }
  0x36   :  { %v2025_v48 = vmul.f32 %v2017_v45, %v2017_v45  ;;  %v2030_v50 = vmul.f32 %v2020_v46, %v2020_v46  ;;  %v2054_v0 = vsel %vm571_vm6, %v569_v61, %v535_v59  ;;  %v2069_v6 = vsel %vm571_vm6, %v570_v5, %v536_v4  ;;  %s76_s13 = scalar_lea.hbm %s2410_s1, %s75_s3  ;;  %s86_s21 = sshll.u32 %s1898_s20, 4  ;;  %s87_s21 = int_to_ptr.vmem [resolvable:$true] %s86_s21 }
  0x37   :  { %v2061_v3 = vmul.f32 %v2054_v0, %v2054_v0  ;;  %v2079_v7 = vmul.f32 %v2069_v6, %v2069_v6  ;;  %s84_s19 = sshll.u32 %s76_s13, 4  ;;  %s2102_s26 = scalar_lea.hbm %s2410_s1, 1024  ;;  %s85_s19 = int_to_ptr.hbm [resolvable:$true] %s84_s19 }
  0x38   :  { %579 = vrot.lane.b32.xlu0 %v2025_v48, %s1896_s0  ;;  %587 = vrot.lane.b32.xlu1 %v2025_v48, %s1892_s30  ;;  %s1441_s22 = sshra.s32 %s85_s19, 4  ;;  %s1442_s22 = int_to_ptr.hbm [resolvable:$true] %s1441_s22 }
  0x39   :  { %598 = vrot.lane.b32.xlu2 %v2030_v50, %s1897_s29  ;;  %s1443_s23 = scalar_lea.hbm %s1442_s22, 1  ;;  %p1446_p1 = scmp.lt.s32.totalorder %s1442_s22, %s2410_s1 }
  0x3a   :  { %p1444_p0 = scmp.ne.s32.totalorder %s1442_s22, %s1443_s23  ;;  %p1447_p2 = scmp.lt.s32.totalorder %s2102_s26, %s1443_s23 }
  0x3c   :  { %p1448_p3 = por %p1447_p2, %p1446_p1 }
  0x3e   :  { %p1449_p4 = pnand %p1448_p3, %p1444_p0 }
  0x40   :  { %583 = vrot.lane.b32.xlu0 %v2025_v48, %s1897_s29  ;;  %594 = vrot.lane.b32.xlu1 %v2030_v50, %s1896_s0 }
  0x41   :  { %602 = vrot.lane.b32.xlu2 %v2030_v50, %s1892_s30 }
  0x48   :  { %609 = vrot.lane.b32.xlu0 %v2061_v3, %s1896_s0  ;;  %613 = vrot.lane.b32.xlu1 %v2061_v3, %s1897_s29 }
  0x49   :  { %617 = vrot.lane.b32.xlu2 %v2061_v3, %s1892_s30 }
  0x50   :  { %624 = vrot.lane.b32.xlu0 %v2079_v7, %s1896_s0  ;;  %628 = vrot.lane.b32.xlu1 %v2079_v7, %s1897_s29 }
  0x51   :  { %632 = vrot.lane.b32.xlu2 %v2079_v7, %s1892_s30 }
  0x52   :  { %1452 = shalt.err (!%p1449_p4)  }
  0x53   :  { %89 = dma.hbm_to_vmem [thread:$0]  %s85_s19, 16, %s87_s21, [#allocation4] }
  0x54   :  { %s91_s6 = sand.u32 7, %s2073_s7   ;;  %s1280_s11 = sshll.u32 %s90_s16, 5 }
  0x55   :  { %s93_s14 = sadd.s32 %s1280_s11, %s91_s6  ;;  %s1899_s18 = smov [#allocation2 + $0x1]  }
  0x56   :  { %s94_s17 = scalar_lea.hbm %s2410_s1, %s93_s14  ;;  %s106_s13 = sshll.u32 %s1899_s18, 4  ;;  %s107_s13 = int_to_ptr.vmem [resolvable:$true] %s106_s13 }
  0x57   :  { %s104_s20 = sshll.u32 %s94_s17, 4  ;;  %s110_s22 = sshrl.u32 %s2075_s8, 3  ;;  %s105_s20 = int_to_ptr.hbm [resolvable:$true] %s104_s20 }
  0x58   :  { %s1465_s23 = sshra.s32 %s105_s20, 4  ;;  %s1466_s23 = int_to_ptr.hbm [resolvable:$true] %s1465_s23 }
  0x59   :  { %s1467_s24 = scalar_lea.hbm %s1466_s23, 1  ;;  %p1470_p6 = scmp.lt.s32.totalorder %s1466_s23, %s2410_s1 }
  0x5a   :  { %p1468_p5 = scmp.ne.s32.totalorder %s1466_s23, %s1467_s24  ;;  %p1471_p7 = scmp.lt.s32.totalorder %s2102_s26, %s1467_s24 }
  0x5c   :  { %p1472_p8 = por %p1471_p7, %p1470_p6 }
  0x5e   :  { %p1473_p9 = pnand %p1472_p8, %p1468_p5 }
  0x60   :  { %1476 = shalt.err (!%p1473_p9)  }
  0x61   :  { %109 = dma.hbm_to_vmem [thread:$0]  %s105_s20, 16, %s107_s13, [#allocation4 + $0x1] }
  0x62   :  { %s111_s7 = sand.u32 7, %s2075_s8   ;;  %s1281_s16 = sshll.u32 %s110_s22, 5 }
  0x63   :  { %s113_s25 = sadd.s32 %s1281_s16, %s111_s7  ;;  %s1900_s11 = smov [#allocation2 + $0x2]  }
  0x64   :  { %s114_s6 = scalar_lea.hbm %s2410_s1, %s113_s25  ;;  %s126_s14 = sshll.u32 %s1900_s11, 4  ;;  %s127_s14 = int_to_ptr.vmem [resolvable:$true] %s126_s14 }
  0x65   :  { %s124_s15 = sshll.u32 %s114_s6, 4  ;;  %s130_s3 = sshrl.u32 %s2081_s9, 3  ;;  %s125_s15 = int_to_ptr.hbm [resolvable:$true] %s124_s15 }
  0x66   :  { %s1489_s17 = sshra.s32 %s125_s15, 4  ;;  %s1490_s17 = int_to_ptr.hbm [resolvable:$true] %s1489_s17 }
  0x67   :  { %s1491_s18 = scalar_lea.hbm %s1490_s17, 1  ;;  %p1494_p11 = scmp.lt.s32.totalorder %s1490_s17, %s2410_s1 }
  0x68   :  { %p1492_p10 = scmp.ne.s32.totalorder %s1490_s17, %s1491_s18  ;;  %p1495_p12 = scmp.lt.s32.totalorder %s2102_s26, %s1491_s18 }
  0x6a   :  { %p1496_p13 = por %p1495_p12, %p1494_p11 }
  0x6c   :  { %p1497_p0 = pnand %p1496_p13, %p1492_p10 }
  0x6e   :  { %1500 = shalt.err (!%p1497_p0)  }
  0x6f   :  { %129 = dma.hbm_to_vmem [thread:$0]  %s125_s15, 16, %s127_s14, [#allocation4 + $0x2] }
  0x70   :  { %s131_s8 = sand.u32 7, %s2081_s9   ;;  %s1282_s22 = sshll.u32 %s130_s3, 5 }
  0x71   :  { %s133_s23 = sadd.s32 %s1282_s22, %s131_s8  ;;  %s1901_s7 = smov [#allocation2 + $0x3]  }
  0x72   :  { %s134_s21 = scalar_lea.hbm %s2410_s1, %s133_s23  ;;  %s146_s16 = sshll.u32 %s1901_s7, 4  ;;  %s147_s16 = int_to_ptr.vmem [resolvable:$true] %s146_s16 }
  0x73   :  { %s144_s25 = sshll.u32 %s134_s21, 4  ;;  %s150_s27 = sshrl.u32 %s2083_s2, 3  ;;  %s145_s25 = int_to_ptr.hbm [resolvable:$true] %s144_s25 }
  0x74   :  { %s1513_s28 = sshra.s32 %s145_s25, 4  ;;  %s1514_s28 = int_to_ptr.hbm [resolvable:$true] %s1513_s28 }
  0x75   :  { %s1515_s6 = scalar_lea.hbm %s1514_s28, 1  ;;  %p1518_p2 = scmp.lt.s32.totalorder %s1514_s28, %s2410_s1 }
  0x76   :  { %p1516_p1 = scmp.ne.s32.totalorder %s1514_s28, %s1515_s6  ;;  %p1519_p3 = scmp.lt.s32.totalorder %s2102_s26, %s1515_s6 }
  0x78   :  { %p1520_p4 = por %p1519_p3, %p1518_p2 }
  0x7a   :  { %p1521_p5 = pnand %p1520_p4, %p1516_p1 }
  0x7c   :  { %1524 = shalt.err (!%p1521_p5)  }
  0x7d   :  { %149 = dma.hbm_to_vmem [thread:$0]  %s145_s25, 16, %s147_s16, [#allocation4 + $0x3] }
  0x7e   :  { %s151_s9 = sand.u32 7, %s2083_s2   ;;  %s1283_s15 = sshll.u32 %s150_s27, 5 }
  0x7f   :  { %s153_s3 = sadd.s32 %s1283_s15, %s151_s9  ;;  %s1902_s20 = smov [#allocation2 + $0x4]  }
  0x80   :  { %s154_s13 = scalar_lea.hbm %s2410_s1, %s153_s3  ;;  %s166_s8 = sshll.u32 %s1902_s20, 4  ;;  %s167_s8 = int_to_ptr.vmem [resolvable:$true] %s166_s8 }
  0x81   :  { %s164_s22 = sshll.u32 %s154_s13, 4  ;;  %s170_s23 = sshrl.u32 %s2085_s10, 3  ;;  %s165_s22 = int_to_ptr.hbm [resolvable:$true] %s164_s22 }
  0x82   :  { %s1537_s24 = sshra.s32 %s165_s22, 4  ;;  %s1538_s24 = int_to_ptr.hbm [resolvable:$true] %s1537_s24 }
  0x83   :  { %s1539_s19 = scalar_lea.hbm %s1538_s24, 1  ;;  %p1542_p7 = scmp.lt.s32.totalorder %s1538_s24, %s2410_s1 }
  0x84   :  { %p1540_p6 = scmp.ne.s32.totalorder %s1538_s24, %s1539_s19  ;;  %p1543_p8 = scmp.lt.s32.totalorder %s2102_s26, %s1539_s19 }
  0x86   :  { %p1544_p9 = por %p1543_p8, %p1542_p7 }
  0x88   :  { %p1545_p10 = pnand %p1544_p9, %p1540_p6 }
  0x8a   :  { %1548 = shalt.err (!%p1545_p10)  }
  0x8b   :  { %169 = dma.hbm_to_vmem [thread:$0]  %s165_s22, 16, %s167_s8, [#allocation4 + $0x4] }
  0x8c   :  { %s171_s2 = sand.u32 7, %s2085_s10   ;;  %s1284_s16 = sshll.u32 %s170_s23, 5 }
  0x8d   :  { %s173_s25 = sadd.s32 %s1284_s16, %s171_s2  ;;  %s1903_s11 = smov [#allocation2 + $0x5]  }
  0x8e   :  { %s174_s6 = scalar_lea.hbm %s2410_s1, %s173_s25  ;;  %s186_s14 = sshll.u32 %s1903_s11, 4  ;;  %s187_s14 = int_to_ptr.vmem [resolvable:$true] %s186_s14 }
  0x8f   :  { %s184_s9 = sshll.u32 %s174_s6, 4  ;;  %s190_s15 = sshrl.u32 %s2087_s12, 3  ;;  %s185_s9 = int_to_ptr.hbm [resolvable:$true] %s184_s9 }
  0x90   :  { %s1561_s3 = sshra.s32 %s185_s9, 4  ;;  %s1562_s3 = int_to_ptr.hbm [resolvable:$true] %s1561_s3 }
  0x91   :  { %s1563_s17 = scalar_lea.hbm %s1562_s3, 1  ;;  %p1566_p12 = scmp.lt.s32.totalorder %s1562_s3, %s2410_s1 }
  0x92   :  { %p1564_p11 = scmp.ne.s32.totalorder %s1562_s3, %s1563_s17  ;;  %p1567_p13 = scmp.lt.s32.totalorder %s2102_s26, %s1563_s17 }
  0x94   :  { %p1568_p0 = por %p1567_p13, %p1566_p12 }
  0x96   :  { %p1569_p1 = pnand %p1568_p0, %p1564_p11 }
  0x98   :  { %1572 = shalt.err (!%p1569_p1)  }
  0x99   :  { %189 = dma.hbm_to_vmem [thread:$0]  %s185_s9, 16, %s187_s14, [#allocation4 + $0x5] }
  0x9a   :  { %s191_s10 = sand.u32 7, %s2087_s12   ;;  %s1285_s20 = sshll.u32 %s190_s15, 5 }
  0x9b   :  { %s193_s8 = sadd.s32 %s1285_s20, %s191_s10  ;;  %s1904_s19 = smov [#allocation2 + $0x6]  }
  0x9c   :  { %s194_s24 = scalar_lea.hbm %s2410_s1, %s193_s8  ;;  %s206_s21 = sshll.u32 %s1904_s19, 4  ;;  %s207_s21 = int_to_ptr.vmem [resolvable:$true] %s206_s21 }
  0x9d   :  { %s204_s7 = sshll.u32 %s194_s24, 4  ;;  %s1277_s2 = sld [smem:[#allocation6 + $0x380]]  ;;  %s205_s7 = int_to_ptr.hbm [resolvable:$true] %s204_s7 }
  0x9e   :  { %s1585_s16 = sshra.s32 %s205_s7, 4  ;;  %s1586_s16 = int_to_ptr.hbm [resolvable:$true] %s1585_s16 }
  0x9f   :  { %s1587_s25 = scalar_lea.hbm %s1586_s16, 1  ;;  %p1590_p3 = scmp.lt.s32.totalorder %s1586_s16, %s2410_s1 }
  0xa0   :  { %p1588_p2 = scmp.ne.s32.totalorder %s1586_s16, %s1587_s25  ;;  %p1591_p4 = scmp.lt.s32.totalorder %s2102_s26, %s1587_s25 }
  0xa2   :  { %p1592_p5 = por %p1591_p4, %p1590_p3 }
  0xa4   :  { %p1593_p6 = pnand %p1592_p5, %p1588_p2 }
  0xa6   :  { %1596 = shalt.err (!%p1593_p6)  }
  0xa7   :  { %209 = dma.hbm_to_vmem [thread:$0]  %s205_s7, 16, %s207_s21, [#allocation4 + $0x6] }
  0xa8   :  { %s1264_s12 = sld [smem:[#allocation6 + $0x2]]  ;;  %s1905_s6 = smov [#allocation2 + $0x7]  }
  0xa9   :  { %s226_s11 = sshll.u32 %s1905_s6, 4  ;;  %s1906_s14 = smov [#allocation3]   ;;  %s227_s11 = int_to_ptr.vmem [resolvable:$true] %s226_s11 }
  0xaa   :  { %s2161_s9 = sshll.u32 %s1906_s14, 4  ;;  %s2164_s15 = sld [smem:[#allocation6 + $0x82]]  ;;  %s246_s9 = int_to_ptr.vmem [resolvable:$true] %s2161_s9 }
  0xab   :  { %s210_s3 = sshrl.u32 %s1277_s2, 3  ;;  %s211_s17 = sand.u32 7, %s1277_s2  }
  0xac   :  { %s1286_s18 = sshll.u32 %s210_s3, 5 }
  0xad   :  { %s213_s13 = sadd.s32 %s1286_s18, %s211_s17 }
  0xae   :  { %s230_s10 = sshrl.u32 %s1264_s12, 3  ;;  %s214_s22 = scalar_lea.hbm %s2410_s1, %s213_s13 }
  0xaf   :  { %s231_s23 = sand.u32 7, %s1264_s12   ;;  %s224_s24 = sshll.u32 %s214_s22, 4  ;;  %s225_s24 = int_to_ptr.hbm [resolvable:$true] %s224_s24 }
  0xb0   :  { %s1287_s19 = sshll.u32 %s230_s10, 5  ;;  %s1609_s7 = sshra.s32 %s225_s24, 4  ;;  %s1610_s7 = int_to_ptr.hbm [resolvable:$true] %s1609_s7 }
  0xb1   :  { %s233_s21 = sadd.s32 %s1287_s19, %s231_s23  ;;  %s1611_s16 = scalar_lea.hbm %s1610_s7, 1 }
  0xb2   :  { %p1612_p7 = scmp.ne.s32.totalorder %s1610_s7, %s1611_s16  ;;  %p1614_p8 = scmp.lt.s32.totalorder %s1610_s7, %s2410_s1 }
  0xb3   :  { %p1615_p9 = scmp.lt.s32.totalorder %s2102_s26, %s1611_s16 }
  0xb5   :  { %p1616_p10 = por %p1615_p9, %p1614_p8 }
  0xb7   :  { %p1617_p11 = pnand %p1616_p10, %p1612_p7 }
  0xb9   :  { %1620 = shalt.err (!%p1617_p11)  }
  0xba   :  { %229 = dma.hbm_to_vmem [thread:$0]  %s225_s24, 16, %s227_s11, [#allocation4 + $0x7] }
  0xbb   :  { %s234_s12 = scalar_lea.hbm %s2410_s1, %s233_s21  ;;  %s249_s6 = sshrl.u32 %s2164_s15, 3 }
  0xbc   :  { %s243_s14 = sshll.u32 %s234_s12, 4  ;;  %s250_s3 = sand.u32 7, %s2164_s15   ;;  %s244_s14 = int_to_ptr.hbm [resolvable:$true] %s243_s14 }
  0xbd   :  { %s1288_s17 = sshll.u32 %s249_s6, 5  ;;  %s1633_s18 = sshra.s32 %s244_s14, 4  ;;  %s1634_s18 = int_to_ptr.hbm [resolvable:$true] %s1633_s18 }
  0xbe   :  { %s1635_s13 = scalar_lea.hbm %s1634_s18, 1  ;;  %p1638_p13 = scmp.lt.s32.totalorder %s1634_s18, %s2410_s1 }
  0xbf   :  { %p1636_p12 = scmp.ne.s32.totalorder %s1634_s18, %s1635_s13  ;;  %p1639_p0 = scmp.lt.s32.totalorder %s2102_s26, %s1635_s13 }
  0xc1   :  { %p1640_p1 = por %p1639_p0, %p1638_p13 }
  0xc3   :  { %p1641_p2 = pnand %p1640_p1, %p1636_p12 }
  0xc5   :  { %1644 = shalt.err (!%p1641_p2)  }
  0xc6   :  { %248 = dma.hbm_to_vmem [thread:$0]  %s244_s14, 16, %s246_s9, [#allocation4 + $0x8] }
  0xc7   :  { %s252_s11 = sadd.s32 %s1288_s17, %s250_s3  ;;  %s1907_s15 = smov [#allocation3 + $0x1]  }
  0xc8   :  { %s265_s8 = sshll.u32 %s1907_s15, 4  ;;  %s253_s24 = scalar_lea.hbm %s2410_s1, %s252_s11  ;;  %s266_s8 = int_to_ptr.vmem [resolvable:$true] %s265_s8 }
  0xc9   :  { %s263_s19 = sshll.u32 %s253_s24, 4  ;;  %s1268_s21 = sld [smem:[#allocation6 + $0x102]]  ;;  %s264_s19 = int_to_ptr.hbm [resolvable:$true] %s263_s19 }
  0xca   :  { %s1657_s7 = sshra.s32 %s264_s19, 4  ;;  %s1658_s7 = int_to_ptr.hbm [resolvable:$true] %s1657_s7 }
  0xcb   :  { %s1659_s16 = scalar_lea.hbm %s1658_s7, 1  ;;  %p1662_p4 = scmp.lt.s32.totalorder %s1658_s7, %s2410_s1 }
  0xcc   :  { %p1660_p3 = scmp.ne.s32.totalorder %s1658_s7, %s1659_s16  ;;  %p1663_p5 = scmp.lt.s32.totalorder %s2102_s26, %s1659_s16 }
  0xce   :  { %p1664_p6 = por %p1663_p5, %p1662_p4 }
  0xd0   :  { %p1665_p7 = pnand %p1664_p6, %p1660_p3 }
  0xd2   :  { %1668 = shalt.err (!%p1665_p7)  }
  0xd3   :  { %268 = dma.hbm_to_vmem [thread:$0]  %s264_s19, 16, %s266_s8, [#allocation4 + $0x9] }
  0xd4   :  { %s1908_s9 = smov [#allocation3 + $0x2]   ;;  %s1270_s28 = sld [smem:[#allocation6 + $0x182]] }
  0xd5   :  { %s285_s2 = sshll.u32 %s1908_s9, 4  ;;  %s1909_s12 = smov [#allocation3 + $0x3]   ;;  %s286_s2 = int_to_ptr.vmem [resolvable:$true] %s285_s2 }
  0xd6   :  { %s2191_s6 = sshll.u32 %s1909_s12, 4  ;;  %s2193_s14 = sld [smem:[#allocation6 + $0x202]]  ;;  %s306_s6 = int_to_ptr.vmem [resolvable:$true] %s2191_s6 }
  0xd7   :  { %s269_s3 = sshrl.u32 %s1268_s21, 3  ;;  %s270_s17 = sand.u32 7, %s1268_s21  }
  0xd8   :  { %s1289_s18 = sshll.u32 %s269_s3, 5 }
  0xd9   :  { %s272_s13 = sadd.s32 %s1289_s18, %s270_s17 }
  0xda   :  { %s273_s11 = scalar_lea.hbm %s2410_s1, %s272_s13  ;;  %s289_s15 = sshrl.u32 %s1270_s28, 3 }
  0xdb   :  { %s283_s8 = sshll.u32 %s273_s11, 4  ;;  %s290_s22 = sand.u32 7, %s1270_s28   ;;  %s284_s8 = int_to_ptr.hbm [resolvable:$true] %s283_s8 }
  0xdc   :  { %s1290_s23 = sshll.u32 %s289_s15, 5  ;;  %s1681_s24 = sshra.s32 %s284_s8, 4  ;;  %s1682_s24 = int_to_ptr.hbm [resolvable:$true] %s1681_s24 }
  0xdd   :  { %s1683_s19 = scalar_lea.hbm %s1682_s24, 1  ;;  %p1686_p9 = scmp.lt.s32.totalorder %s1682_s24, %s2410_s1 }
  0xde   :  { %p1684_p8 = scmp.ne.s32.totalorder %s1682_s24, %s1683_s19  ;;  %p1687_p10 = scmp.lt.s32.totalorder %s2102_s26, %s1683_s19 }
  0xe0   :  { %p1688_p11 = por %p1687_p10, %p1686_p9 }
  0xe2   :  { %p1689_p12 = pnand %p1688_p11, %p1684_p8 }
  0xe4   :  { %1692 = shalt.err (!%p1689_p12)  }
  0xe5   :  { %288 = dma.hbm_to_vmem [thread:$0]  %s284_s8, 16, %s286_s2, [#allocation4 + $0xa] }
  0xe6   :  { %s292_s21 = sadd.s32 %s1290_s23, %s290_s22  ;;  %s309_s25 = sshrl.u32 %s2193_s14, 3 }
  0xe7   :  { %s293_s28 = scalar_lea.hbm %s2410_s1, %s292_s21  ;;  %s310_s12 = sand.u32 7, %s2193_s14  }
  0xe8   :  { %s303_s3 = sshll.u32 %s293_s28, 4  ;;  %s1291_s17 = sshll.u32 %s309_s25, 5  ;;  %s304_s3 = int_to_ptr.hbm [resolvable:$true] %s303_s3 }
  0xe9   :  { %s312_s18 = sadd.s32 %s1291_s17, %s310_s12  ;;  %s1705_s13 = sshra.s32 %s304_s3, 4  ;;  %s1706_s13 = int_to_ptr.hbm [resolvable:$true] %s1705_s13 }
  0xea   :  { %s1707_s10 = scalar_lea.hbm %s1706_s13, 1  ;;  %p1710_p0 = scmp.lt.s32.totalorder %s1706_s13, %s2410_s1 }
  0xeb   :  { %p1708_p13 = scmp.ne.s32.totalorder %s1706_s13, %s1707_s10  ;;  %p1711_p1 = scmp.lt.s32.totalorder %s2102_s26, %s1707_s10 }
  0xed   :  { %p1712_p2 = por %p1711_p1, %p1710_p0 }
  0xef   :  { %p1713_p3 = pnand %p1712_p2, %p1708_p13 }
  0xf1   :  { %1716 = shalt.err (!%p1713_p3)  }
  0xf2   :  { %308 = dma.hbm_to_vmem [thread:$0]  %s304_s3, 16, %s306_s6, [#allocation4 + $0xb] }
  0xf3   :  { %s313_s15 = scalar_lea.hbm %s2410_s1, %s312_s18  ;;  %s1910_s8 = smov [#allocation3 + $0x4]  }
  0xf4   :  { %s325_s22 = sshll.u32 %s1910_s8, 4  ;;  %s323_s23 = sshll.u32 %s313_s15, 4  ;;  %s326_s22 = int_to_ptr.vmem [resolvable:$true] %s325_s22  ;;  %s324_s23 = int_to_ptr.hbm [resolvable:$true] %s323_s23 }
  0xf5   :  { %s1274_s24 = sld [smem:[#allocation6 + $0x282]]  ;;  %s1729_s19 = sshra.s32 %s324_s23, 4  ;;  %s1730_s19 = int_to_ptr.hbm [resolvable:$true] %s1729_s19 }
  0xf6   :  { %s1731_s7 = scalar_lea.hbm %s1730_s19, 1  ;;  %p1734_p5 = scmp.lt.s32.totalorder %s1730_s19, %s2410_s1 }
  0xf7   :  { %p1732_p4 = scmp.ne.s32.totalorder %s1730_s19, %s1731_s7  ;;  %p1735_p6 = scmp.lt.s32.totalorder %s2102_s26, %s1731_s7 }
  0xf9   :  { %p1736_p7 = por %p1735_p6, %p1734_p5 }
  0xfb   :  { %p1737_p8 = pnand %p1736_p7, %p1732_p4 }
  0xfd   :  { %1740 = shalt.err (!%p1737_p8)  }
  0xfe   :  { %328 = dma.hbm_to_vmem [thread:$0]  %s324_s23, 16, %s326_s22, [#allocation4 + $0xc]  ;;  %v580_v8 = vpop.permute.xlu0 %579 }
  0xff   :  { %s1276_s6 = sld [smem:[#allocation6 + $0x302]]  ;;  %s1911_s25 = smov [#allocation3 + $0x5]  }
 0x100   :  { %s345_s27 = sshll.u32 %s1911_s25, 4  ;;  %s1912_s9 = smov [#allocation3 + $0x6]   ;;  %s346_s27 = int_to_ptr.vmem [resolvable:$true] %s345_s27 }
 0x101   :  { %s2221_s28 = sshll.u32 %s1912_s9, 4  ;;  %s2224_s12 = sld [smem:[#allocation6 + $0x382]]  ;;  %s366_s28 = int_to_ptr.vmem [resolvable:$true] %s2221_s28 }
 0x102   :  { %s329_s3 = sshrl.u32 %s1274_s24, 3  ;;  %s330_s17 = sand.u32 7, %s1274_s24  }
 0x103   :  { %s1292_s18 = sshll.u32 %s329_s3, 5 }
 0x104   :  { %s332_s13 = sadd.s32 %s1292_s18, %s330_s17 }
 0x105   :  { %s349_s10 = sshrl.u32 %s1276_s6, 3  ;;  %s333_s14 = scalar_lea.hbm %s2410_s1, %s332_s13 }
 0x106   :  { %s350_s11 = sand.u32 7, %s1276_s6   ;;  %s343_s15 = sshll.u32 %s333_s14, 4  ;;  %s344_s15 = int_to_ptr.hbm [resolvable:$true] %s343_s15 }
 0x107   :  { %s1293_s8 = sshll.u32 %s349_s10, 5  ;;  %s1753_s23 = sshra.s32 %s344_s15, 4  ;;  %s1754_s23 = int_to_ptr.hbm [resolvable:$true] %s1753_s23 }
 0x108   :  { %s352_s22 = sadd.s32 %s1293_s8, %s350_s11  ;;  %s1755_s19 = scalar_lea.hbm %s1754_s23, 1 }
 0x109   :  { %p1756_p9 = scmp.ne.s32.totalorder %s1754_s23, %s1755_s19  ;;  %p1758_p10 = scmp.lt.s32.totalorder %s1754_s23, %s2410_s1 }
 0x10a   :  { %p1759_p11 = scmp.lt.s32.totalorder %s2102_s26, %s1755_s19 }
 0x10c   :  { %p1760_p12 = por %p1759_p11, %p1758_p10 }
 0x10e   :  { %p1761_p13 = pnand %p1760_p12, %p1756_p9 }
 0x110   :  { %1764 = shalt.err (!%p1761_p13)  }
 0x111   :  { %348 = dma.hbm_to_vmem [thread:$0]  %s344_s15, 16, %s346_s27, [#allocation4 + $0xd]  ;;  %v588_v9 = vpop.permute.xlu1 %587  ;;  %v599_v10 = vpop.permute.xlu2 %598 }
 0x112   :  { %s353_s6 = scalar_lea.hbm %s2410_s1, %s352_s22  ;;  %s369_s25 = sshrl.u32 %s2224_s12, 3 }
 0x113   :  { %s363_s9 = sshll.u32 %s353_s6, 4  ;;  %s370_s3 = sand.u32 7, %s2224_s12   ;;  %s364_s9 = int_to_ptr.hbm [resolvable:$true] %s363_s9 }
 0x114   :  { %s1294_s17 = sshll.u32 %s369_s25, 5  ;;  %s1777_s18 = sshra.s32 %s364_s9, 4  ;;  %s1778_s18 = int_to_ptr.hbm [resolvable:$true] %s1777_s18 }
 0x115   :  { %s1779_s13 = scalar_lea.hbm %s1778_s18, 1  ;;  %p1782_p1 = scmp.lt.s32.totalorder %s1778_s18, %s2410_s1 }
 0x116   :  { %p1780_p0 = scmp.ne.s32.totalorder %s1778_s18, %s1779_s13  ;;  %p1783_p2 = scmp.lt.s32.totalorder %s2102_s26, %s1779_s13 }
 0x118   :  { %p1784_p3 = por %p1783_p2, %p1782_p1 }
 0x11a   :  { %p1785_p4 = pnand %p1784_p3, %p1780_p0 }
 0x11c   :  { %1788 = shalt.err (!%p1785_p4)  }
 0x11d   :  { %368 = dma.hbm_to_vmem [thread:$0]  %s364_s9, 16, %s366_s28, [#allocation4 + $0xe]  ;;  %v582_v11 = vadd.f32 %v580_v8, %v2025_v48  ;;  %v584_v12 = vpop.permute.xlu0 %583 }
 0x11e   :  { %s372_s20 = sadd.s32 %s1294_s17, %s370_s3  ;;  %s1913_s12 = smov [#allocation3 + $0x7]  }
 0x11f   :  { %s385_s2 = sshll.u32 %s1913_s12, 4  ;;  %s373_s15 = scalar_lea.hbm %s2410_s1, %s372_s20  ;;  %v586_v13 = vadd.f32 %v584_v12, %v582_v11  ;;  %s386_s2 = int_to_ptr.vmem [resolvable:$true] %s385_s2 }
 0x120   :  { %s383_s8 = sshll.u32 %s373_s15, 4  ;;  %s384_s8 = int_to_ptr.hbm [resolvable:$true] %s383_s8 }
 0x121   :  { %s1801_s22 = sshra.s32 %s384_s8, 4  ;;  %s1802_s22 = int_to_ptr.hbm [resolvable:$true] %s1801_s22 }
 0x122   :  { %s1803_s23 = scalar_lea.hbm %s1802_s22, 1  ;;  %p1806_p6 = scmp.lt.s32.totalorder %s1802_s22, %s2410_s1 }
 0x123   :  { %p1804_p5 = scmp.ne.s32.totalorder %s1802_s22, %s1803_s23  ;;  %p1807_p7 = scmp.lt.s32.totalorder %s2102_s26, %s1803_s23 }
 0x125   :  { %p1808_p8 = por %p1807_p7, %p1806_p6 }
 0x127   :  { %p1809_p9 = pnand %p1808_p8, %p1804_p5 }
 0x129   :  { %1812 = shalt.err (!%p1809_p9)  }
 0x12a   :  { %388 = dma.hbm_to_vmem [thread:$0]  %s384_s8, 16, %s386_s2, [#allocation4 + $0xf]  ;;  %v590_v14 = vadd.f32 %v588_v9, %v586_v13  ;;  %v595_v15 = vpop.permute.xlu1 %594  ;;  %v603_v16 = vpop.permute.xlu2 %602  ;;  %vm649_vm7 = vcmask 261120  }
 0x12b   :  { %v610_v20 = vpop.permute.xlu0 %609 }
 0x12c   :  { %v592_v17 = vadd.f32 %v2030_v50, %v590_v14 }
 0x12e   :  { %v597_v18 = vadd.f32 %v595_v15, %v592_v17 }
 0x130   :  { %v601_v19 = vadd.f32 %v599_v10, %v597_v18 }
 0x132   :  { %v605_v21 = vadd.f32 %v603_v16, %v601_v19  ;;  %v614_v22 = vpop.permute.xlu1 %613  ;;  %v618_v24 = vpop.permute.xlu2 %617 }
 0x133   :  { %v625_v28 = vpop.permute.xlu0 %624 }
 0x134   :  { %v607_v23 = vadd.f32 %v2061_v3, %v605_v21 }
 0x136   :  { %v612_v25 = vadd.f32 %v610_v20, %v607_v23 }
 0x138   :  { %v616_v26 = vadd.f32 %v614_v22, %v612_v25 }
 0x13a   :  { %v620_v27 = vadd.f32 %v618_v24, %v616_v26  ;;  %v629_v30 = vpop.permute.xlu1 %628  ;;  %v633_v32 = vpop.permute.xlu2 %632 }
 0x13c   :  { %v622_v29 = vadd.f32 %v2079_v7, %v620_v27 }
 0x13e   :  { %v627_v31 = vadd.f32 %v625_v28, %v622_v29 }
 0x140   :  { %v631_v33 = vadd.f32 %v629_v30, %v627_v31 }
 0x142   :  { %v635_v34 = vadd.f32 %v633_v32, %v631_v33 }
 0x144   :  { %1371 = vrsqrt.f32 %v635_v34  ;;  %vm643_vm8 = vcmp.eq.f32.partialorder %v635_v34, inf  ;;  %v646_v42 = vand.u32 2147483648, %v635_v34  ;;  %vm645_vm9 = vcmp.eq.f32.partialorder %v635_v34, 0.0 }
 0x14a   :  { %v1372_v35 = vpop.eup %1371 }
 0x14b   :  { %v637_v36 = vmul.f32 %v1372_v35, %v635_v34 }
 0x14d   :  { %v638_v37 = vmul.f32 %v1372_v35, %v637_v36 }
 0x14f   :  { %v639_v38 = vmul.f32 0.5, %v638_v37 }
 0x151   :  { %v640_v39 = vsub.f32 1.5, %v639_v38 }
 0x153   :  { %v641_v40 = vmul.f32 %v1372_v35, %v640_v39 }
 0x155   :  { %v642_v41 = vmul.f32 %v641_v40, %v635_v34 }
 0x157   :  { %v644_v43 = vsel %vm643_vm8, %v635_v34, %v642_v41 }
 0x158   :  { %v647_v44 = vsel %vm645_vm9, %v646_v42, %v644_v43 }
 0x159   :  { %1319 = vst.msk [vmem:[%s2414_s5 + $0x8] sm:$0xff] %vm649_vm7, %v647_v44 }
 0x15a   :  { %1855 = dma.done.wait [#allocation4], 16 }
 0x15b   :  { %1856 = vsyncadd [#allocation4], 4294967280 }
 0x15c   :  { %1857 = dma.done.wait [#allocation4 + $0x1], 16 }
 0x15d   :  { %1858 = vsyncadd [#allocation4 + $0x1], 4294967280 }
 0x15e   :  { %1859 = dma.done.wait [#allocation4 + $0x2], 16 }
 0x15f   :  { %1860 = vsyncadd [#allocation4 + $0x2], 4294967280 }
 0x160   :  { %1861 = dma.done.wait [#allocation4 + $0x3], 16 }
 0x161   :  { %1862 = vsyncadd [#allocation4 + $0x3], 4294967280 }
 0x162   :  { %1863 = dma.done.wait [#allocation4 + $0x4], 16 }
 0x163   :  { %1864 = vsyncadd [#allocation4 + $0x4], 4294967280 }
 0x164   :  { %1865 = dma.done.wait [#allocation4 + $0x5], 16 }
 0x165   :  { %1866 = vsyncadd [#allocation4 + $0x5], 4294967280 }
 0x166   :  { %1867 = dma.done.wait [#allocation4 + $0x6], 16 }
 0x167   :  { %1868 = vsyncadd [#allocation4 + $0x6], 4294967280  ;;  %795 = vrot.lane.b32.xlu0 %v2054_v0, %s1892_s30  ;;  %813 = vrot.lane.b32.xlu1 %v2054_v0, %s1897_s29 }
 0x168   :  { %1869 = dma.done.wait [#allocation4 + $0x7], 16 }
 0x169   :  { %1870 = vsyncadd [#allocation4 + $0x7], 4294967280  ;;  %711 = vrot.lane.b32.xlu2 %v2017_v45, %s1896_s0  ;;  %v2271_v47 = vld [vmem:[#allocation2] sm:$0xff]  ;;  %vm936_vm0 = vcmask 523264   ;;  %vm938_vm1 = vcmask 785408  }
 0x16a   :  { %v776_v48 = vmul.f32 %v2271_v47, %v2054_v0  ;;  %v2302_v58 = vmul.f32 %v2271_v47, %v2017_v45 }
 0x16f   :  { %791 = vrot.lane.b32.xlu0 %v2054_v0, %s1896_s0  ;;  %715 = vrot.lane.b32.xlu1 %v2017_v45, %s1892_s30 }
 0x171   :  { %733 = vrot.lane.b32.xlu2 %v2017_v45, %s1897_s29 }
 0x177   :  { %848 = vrot.lane.b32.xlu1 %v2069_v6, %s1897_s29  ;;  %778 = vrot.lane.b32.xlu0 %v776_v48, %s1896_s0 }
 0x179   :  { %782 = vrot.lane.b32.xlu2 %v776_v48, %s1897_s29 }
 0x181   :  { %786 = vrot.lane.b32.xlu2 %v776_v48, %s1892_s30 }
 0x189   :  { %844 = vrot.lane.b32.xlu2 %v2069_v6, %s1896_s0 }
 0x1c3   :  { %v712_v55 = vpop.permute.xlu2 %711 }
 0x1c4   :  { %v2310_v60 = vmul.f32 %v712_v55, %v2271_v47 }
 0x1cb   :  { %v734_v59 = vpop.permute.xlu2 %733 }
 0x1cc   :  { %v2313_v61 = vmul.f32 %v734_v59, %v2271_v47 }
 0x1d3   :  { %v783_v45 = vpop.permute.xlu2 %782 }
 0x1d9   :  { %v796_v49 = vpop.permute.xlu0 %795  ;;  %v814_v51 = vpop.permute.xlu1 %813 }
 0x1da   :  { %v798_v50 = vmul.f32 %v796_v49, %v2271_v47  ;;  %v816_v52 = vmul.f32 %v814_v51, %v2271_v47 }
 0x1db   :  { %v787_v63 = vpop.permute.xlu2 %786 }
 0x1dc   :  { %800 = vrot.lane.b32.xlu1 %v798_v50, %s1896_s0 }
 0x1e1   :  { %v792_v53 = vpop.permute.xlu0 %791  ;;  %v716_v56 = vpop.permute.xlu1 %715 }
 0x1e2   :  { %v794_v54 = vmul.f32 %v792_v53, %v2271_v47  ;;  %v2298_v57 = vmul.f32 %v716_v56, %v2271_v47 }
 0x1e3   :  { %v845_v2 = vpop.permute.xlu2 %844 }
 0x1e4   :  { %818 = vrot.lane.b32.xlu1 %v816_v52, %s1896_s0  ;;  %830 = vrot.lane.b32.xlu2 %v794_v54, %s1896_s0 }
 0x1e5   :  { %805 = vrot.lane.b32.xlu0 %v794_v54, %s1897_s29 }
 0x1e9   :  { %v849_v62 = vpop.permute.xlu1 %848  ;;  %v779_v0 = vpop.permute.xlu0 %778 }
 0x1ea   :  { %v781_v9 = vsub.f32 %v776_v48, %v779_v0 }
 0x1ec   :  { %822 = vrot.lane.b32.xlu1 %v816_v52, %s1897_s29  ;;  %852 = vrot.lane.b32.xlu2 %v2069_v6, %s1892_s30  ;;  %v785_v11 = vsub.f32 %v781_v9, %v783_v45 }
 0x1ed   :  { %809 = vrot.lane.b32.xlu0 %v798_v50, %s1892_s30 }
 0x1ee   :  { %v789_v19 = vsub.f32 %v785_v11, %v787_v63 }
 0x1f0   :  { %v2342_v23 = vadd.f32 %v789_v19, %v2069_v6 }
 0x1f2   :  { %v856_v30 = vmul.f32 %v2342_v23, %v2342_v23 }
 0x1f4   :  { %834 = vrot.lane.b32.xlu1 %v798_v50, %s1897_s29  ;;  %764 = vrot.lane.b32.xlu2 %v2020_v46, %s1896_s0 }
 0x1f5   :  { %826 = vrot.lane.b32.xlu0 %v816_v52, %s1892_s30 }
 0x1fc   :  { %720 = vrot.lane.b32.xlu2 %v2298_v57, %s1896_s0  ;;  %702 = vrot.lane.b32.xlu1 %v2302_v58, %s1897_s29 }
 0x1fd   :  { %838 = vrot.lane.b32.xlu0 %v794_v54, %s1892_s30 }
 0x204   :  { %738 = vrot.lane.b32.xlu2 %v2313_v61, %s1896_s0  ;;  %725 = vrot.lane.b32.xlu1 %v2310_v60, %s1897_s29 }
 0x205   :  { %698 = vrot.lane.b32.xlu0 %v2302_v58, %s1896_s0 }
 0x20c   :  { %750 = vrot.lane.b32.xlu2 %v2310_v60, %s1896_s0  ;;  %742 = vrot.lane.b32.xlu1 %v2313_v61, %s1897_s29 }
 0x20d   :  { %706 = vrot.lane.b32.xlu0 %v2302_v58, %s1892_s30 }
 0x214   :  { %754 = vrot.lane.b32.xlu1 %v2298_v57, %s1897_s29  ;;  %772 = vrot.lane.b32.xlu2 %v2020_v46, %s1892_s30 }
 0x215   :  { %729 = vrot.lane.b32.xlu0 %v2298_v57, %s1892_s30 }
 0x21c   :  { %768 = vrot.lane.b32.xlu1 %v2020_v46, %s1897_s29 }
 0x21d   :  { %746 = vrot.lane.b32.xlu0 %v2313_v61, %s1892_s30 }
 0x225   :  { %758 = vrot.lane.b32.xlu0 %v2310_v60, %s1892_s30 }
 0x23e   :  { %v831_v5 = vpop.permute.xlu2 %830 }
 0x23f   :  { %v833_v22 = vadd.f32 %v831_v5, %v798_v50 }
 0x246   :  { %v853_v14 = vpop.permute.xlu2 %852 }
 0x24e   :  { %v801_v1 = vpop.permute.xlu1 %800  ;;  %v765_v29 = vpop.permute.xlu2 %764 }
 0x24f   :  { %v803_v10 = vadd.f32 %v801_v1, %v794_v54 }
 0x256   :  { %v819_v3 = vpop.permute.xlu1 %818  ;;  %v721_v39 = vpop.permute.xlu2 %720 }
 0x257   :  { %v806_v4 = vpop.permute.xlu0 %805  ;;  %v821_v12 = vsub.f32 %v816_v52, %v819_v3  ;;  %v723_v50 = vadd.f32 %v721_v39, %v2310_v60  ;;  %v970_v3 = vld [vmem:[#allocation10 + $0xf0] sm:$0xff]  ;;  %v968_v60 = vld [vmem:[#allocation10 + $0xe0] sm:$0xff] }
 0x258   :  { %v808_v13 = vadd.f32 %v806_v4, %v803_v10  ;;  %v971_v4 = vld [vmem:[#allocation10 + $0xf8] sm:$0xff]  ;;  %972 = vmatpush.msra.mxu0 %v970_v3 }
 0x259   :  { %992 = vmatpush.msra.mxu1 %v971_v4 }
 0x25a   :  { %973 = vmatpush.msra.mxu0 %v968_v60  ;;  %v965_v60 = vld [vmem:[#allocation10 + $0xc8] sm:$0xff] }
 0x25e   :  { %v823_v7 = vpop.permute.xlu1 %822  ;;  %v739_v51 = vpop.permute.xlu2 %738 }
 0x25f   :  { %v810_v8 = vpop.permute.xlu0 %809  ;;  %v825_v15 = vadd.f32 %v823_v7, %v821_v12  ;;  %v741_v5 = vsub.f32 %v2313_v61, %v739_v51 }
 0x260   :  { %v812_v16 = vsub.f32 %v808_v13, %v810_v8  ;;  %v969_v8 = vld [vmem:[#allocation10 + $0xe8] sm:$0xff] }
 0x261   :  { %993 = vmatpush.msra.mxu1 %v969_v8  ;;  %v961_v8 = vld [vmem:[#allocation10 + $0xa8] sm:$0xff] }
 0x262   :  { %v2339_v21 = vadd.f32 %v845_v2, %v812_v16 }
 0x264   :  { %v857_v25 = vmul.f32 %v2339_v21, %v2339_v21 }
 0x266   :  { %v835_v17 = vpop.permute.xlu1 %834  ;;  %v858_v33 = vadd.f32 %v857_v25, %v856_v30  ;;  %v751_v9 = vpop.permute.xlu2 %750 }
 0x267   :  { %v827_v18 = vpop.permute.xlu0 %826  ;;  %v837_v26 = vsub.f32 %v833_v22, %v835_v17 }
 0x268   :  { %v829_v20 = vadd.f32 %v827_v18, %v825_v15  ;;  %v753_v18 = vadd.f32 %v751_v9, %v2298_v57  ;;  %v958_v9 = vld [vmem:[#allocation10 + $0x90] sm:$0xff] }
 0x26a   :  { %v2344_v24 = vadd.f32 %v849_v62, %v829_v20 }
 0x26c   :  { %v859_v31 = vmul.f32 %v2344_v24, %v2344_v24 }
 0x26e   :  { %v703_v27 = vpop.permute.xlu1 %702  ;;  %v860_v6 = vadd.f32 %v859_v31, %v858_v33  ;;  %v773_v33 = vpop.permute.xlu2 %772 }
 0x26f   :  { %v839_v28 = vpop.permute.xlu0 %838 }
 0x270   :  { %v841_v32 = vadd.f32 %v839_v28, %v837_v26 }
 0x272   :  { %v2352_v34 = vadd.f32 %v853_v14, %v841_v32 }
 0x274   :  { %v861_v35 = vmul.f32 %v2352_v34, %v2352_v34 }
 0x276   :  { %v862_v36 = vadd.f32 %v861_v35, %v860_v6  ;;  %v726_v37 = vpop.permute.xlu1 %725 }
 0x277   :  { %v699_v38 = vpop.permute.xlu0 %698  ;;  %v728_v54 = vadd.f32 %v726_v37, %v723_v50 }
 0x278   :  { %1373 = vrsqrt.f32 %v862_v36  ;;  %v701_v44 = vsub.f32 %v2302_v58, %v699_v38  ;;  %vm870_vm10 = vcmp.eq.f32.partialorder %v862_v36, inf  ;;  %v873_v2 = vand.u32 2147483648, %v862_v36 }
 0x279   :  { %vm872_vm11 = vcmp.eq.f32.partialorder %v862_v36, 0.0 }
 0x27a   :  { %v705_v52 = vsub.f32 %v701_v44, %v703_v27 }
 0x27e   :  { %v1374_v40 = vpop.eup %1373  ;;  %v743_v41 = vpop.permute.xlu1 %742 }
 0x27f   :  { %v707_v42 = vpop.permute.xlu0 %706  ;;  %v864_v43 = vmul.f32 %v1374_v40, %v862_v36  ;;  %v745_v10 = vadd.f32 %v743_v41, %v741_v5  ;;  %v962_v5 = vld [vmem:[#allocation10 + $0xb0] sm:$0xff] }
 0x280   :  { %v709_v55 = vsub.f32 %v705_v52, %v707_v42 }
 0x281   :  { %v865_v48 = vmul.f32 %v1374_v40, %v864_v43 }
 0x282   :  { %v762_v0 = vadd.f32 %v709_v55, %v2020_v46 }
 0x283   :  { %v866_v49 = vmul.f32 0.5, %v865_v48 }
 0x284   :  { %v890_v11 = vmul.f32 %v2342_v23, %v762_v0  ;;  %v898_v14 = vsub.f32 0.0, %v762_v0 }
 0x285   :  { %v867_v53 = vsub.f32 1.5, %v866_v49 }
 0x286   :  { %v755_v56 = vpop.permute.xlu1 %754  ;;  %v899_v19 = vmul.f32 %v898_v14, %v2339_v21  ;;  %v907_v28 = vmul.f32 %v898_v14, %v2344_v24 }
 0x287   :  { %v730_v59 = vpop.permute.xlu0 %729  ;;  %v868_v45 = vmul.f32 %v1374_v40, %v867_v53  ;;  %v757_v30 = vsub.f32 %v753_v18, %v755_v56  ;;  %v949_v18 = vld [vmem:[#allocation10 + $0x48] sm:$0xff] }
 0x288   :  { %v732_v62 = vsub.f32 %v728_v54, %v730_v59 }
 0x289   :  { %v869_v63 = vmul.f32 %v868_v45, %v862_v36 }
 0x28a   :  { %v767_v1 = vadd.f32 %v765_v29, %v732_v62  ;;  %v915_v29 = vmul.f32 %v898_v14, %v2352_v34  ;;  %v952_v14 = vld [vmem:[#allocation10 + $0x60] sm:$0xff] }
 0x28b   :  { %v871_v58 = vsel %vm870_vm10, %v862_v36, %v869_v63 }
 0x28c   :  { %v874_v7 = vsel %vm872_vm11, %v873_v2, %v871_v58  ;;  %v891_v46 = vmul.f32 %v2339_v21, %v767_v1  ;;  %v916_v22 = vmul.f32 %v2344_v24, %v767_v1  ;;  %v908_v25 = vmul.f32 %v2352_v34, %v767_v1 }
 0x28d   :  { %1375 = vrcp.f32 %v874_v7  ;;  %v900_v26 = vmul.f32 %v2342_v23, %v767_v1  ;;  %v886_v39 = vand.u32 2147483648, %v874_v7  ;;  %vm880_vm13 = vweird.f32 %v874_v7 }
 0x28e   :  { %v769_v13 = vpop.permute.xlu1 %768  ;;  %v892_v16 = vadd.f32 %v891_v46, %v890_v11  ;;  %v917_v40 = vsub.f32 %v915_v29, %v916_v22  ;;  %v909_v41 = vadd.f32 %v908_v25, %v907_v28  ;;  %v884_v48 = vand.u32 2147483647, %v874_v7  ;;  %v956_v11 = vld [vmem:[#allocation10 + $0x80] sm:$0xff]  ;;  %v957_v46 = vld [vmem:[#allocation10 + $0x88] sm:$0xff] }
 0x28f   :  { %v747_v12 = vpop.permute.xlu0 %746  ;;  %v901_v42 = vadd.f32 %v900_v26, %v899_v19  ;;  %v887_v56 = vor.u32 1.1754944e-38, %v886_v39  ;;  %v946_v19 = vld [vmem:[#allocation10 + $0x30] sm:$0xff]  ;;  %v944_v22 = vld [vmem:[#allocation10 + $0x20] sm:$0xff]  ;;  %v945_v25 = vld [vmem:[#allocation10 + $0x28] sm:$0xff] }
 0x290   :  { %v749_v15 = vadd.f32 %v747_v12, %v745_v10  ;;  %vm885_vm15 = vcmp.eq.f32.partialorder %v884_v48, 8.507059e+37  ;;  %v959_v10 = vld [vmem:[#allocation10 + $0x98] sm:$0xff]  ;;  %v954_v12 = vld [vmem:[#allocation10 + $0x70] sm:$0xff]  ;;  %v940_v28 = vld [vmem:[#allocation10] sm:$0xff] }
 0x291   :  { %v942_v26 = vld [vmem:[#allocation10 + $0x10] sm:$0xff]  ;;  %v941_v29 = vld [vmem:[#allocation10 + $0x8] sm:$0xff] }
 0x292   :  { %v771_v17 = vadd.f32 %v769_v13, %v749_v15  ;;  %v955_v13 = vld [vmem:[#allocation10 + $0x78] sm:$0xff]  ;;  %v953_v15 = vld [vmem:[#allocation10 + $0x68] sm:$0xff] }
 0x293   :  { %v1376_v61 = vpop.eup %1375 }
 0x294   :  { %v876_v20 = vmul.f32 %v1376_v61, %v874_v7  ;;  %v893_v27 = vmul.f32 %v2344_v24, %v771_v17  ;;  %v918_v57 = vmul.f32 %v2339_v21, %v771_v17  ;;  %v910_v6 = vmul.f32 %v2342_v23, %v771_v17  ;;  %v963_v7 = vld [vmem:[#allocation10 + $0xb8] sm:$0xff] }
 0x295   :  { %v902_v35 = vmul.f32 %v2352_v34, %v771_v17  ;;  %vm881_vm12 = vweird.f32 %v1376_v61  ;;  %v951_v17 = vld [vmem:[#allocation10 + $0x58] sm:$0xff] }
 0x296   :  { %v877_v31 = vsub.f32 1.0, %v876_v20  ;;  %v894_v36 = vadd.f32 %v893_v27, %v892_v16  ;;  %vm882_vm14 = vmor %vm880_vm13, %vm881_vm12  ;;  %v919_v49 = vadd.f32 %v918_v57, %v917_v40  ;;  %v911_v50 = vadd.f32 %v910_v6, %v909_v41  ;;  %v950_v16 = vld [vmem:[#allocation10 + $0x50] sm:$0xff]  ;;  %v947_v20 = vld [vmem:[#allocation10 + $0x38] sm:$0xff] }
 0x297   :  { %v759_v32 = vpop.permute.xlu0 %758  ;;  %v903_v51 = vsub.f32 %v901_v42, %v902_v35  ;;  %v943_v27 = vld [vmem:[#allocation10 + $0x18] sm:$0xff] }
 0x298   :  { %v761_v37 = vadd.f32 %v759_v32, %v757_v30  ;;  %v878_v38 = vmul.f32 %v1376_v61, %v877_v31 }
 0x29a   :  { %v775_v43 = vadd.f32 %v773_v33, %v761_v37  ;;  %v879_v44 = vadd.f32 %v1376_v61, %v878_v38 }
 0x29c   :  { %v883_v52 = vsel %vm882_vm14, %v1376_v61, %v879_v44  ;;  %v920_v53 = vmul.f32 %v2342_v23, %v775_v43  ;;  %v912_v54 = vmul.f32 %v2339_v21, %v775_v43  ;;  %v904_v55 = vmul.f32 %v2344_v24, %v775_v43  ;;  %v966_v23 = vld [vmem:[#allocation10 + $0xd0] sm:$0xff]  ;;  %v967_v24 = vld [vmem:[#allocation10 + $0xd8] sm:$0xff]  ;;  %v948_v61 = vld [vmem:[#allocation10 + $0x40] sm:$0xff] }
 0x29d   :  { %v895_v59 = vmul.f32 %v2352_v34, %v775_v43  ;;  %v888_v0 = vsel %vm885_vm15, %v887_v56, %v883_v52  ;;  %v2384_v21 = vmul.f32 %v2271_v47, %v2271_v47  ;;  %v964_v34 = vld [vmem:[#allocation10 + $0xc0] sm:$0xff]  ;;  %974 = vmatpush.msra.mxu0 %v966_v23  ;;  %994 = vmatpush.msra.mxu1 %v967_v24 }
 0x29e   :  { %v921_v45 = vadd.f32 %v920_v53, %v919_v49  ;;  %v913_v62 = vsub.f32 %v911_v50, %v912_v54  ;;  %v905_v63 = vadd.f32 %v904_v55, %v903_v51  ;;  %v960_v47 = vld [vmem:[#allocation10 + $0xa0] sm:$0xff] }
 0x29f   :  { %v896_v1 = vadd.f32 %v895_v59, %v894_v36  ;;  %975 = vmatpush.msra.mxu0 %v964_v34  ;;  %995 = vmatpush.msra.mxu1 %v965_v60 }
 0x2a0   :  { %v922_v2 = vmul.f32 %v921_v45, %v888_v0  ;;  %v914_v58 = vmul.f32 %v913_v62, %v888_v0  ;;  %v906_v3 = vmul.f32 %v905_v63, %v888_v0 }
 0x2a1   :  { %v2377_v4 = vmul.f32 %v896_v1, %v888_v0  ;;  %976 = vmatpush.msra.mxu0 %v962_v5  ;;  %996 = vmatpush.msra.mxu1 %v963_v7 }
 0x2a2   :  { %932 = vrot.lane.b32.xlu2 %v922_v2, %s1896_s0  ;;  %928 = vrot.lane.b32.xlu1 %v914_v58, %s1897_s29 }
 0x2a3   :  { %924 = vrot.lane.b32.xlu0 %v906_v3, %s1892_s30  ;;  %977 = vmatpush.msra.mxu0 %v960_v47 }
 0x2a4   :  { %997 = vmatpush.msra.mxu1 %v961_v8 }
 0x2a5   :  { %978 = vmatpush.msra.mxu0 %v958_v9 }
 0x2a6   :  { %998 = vmatpush.msra.mxu1 %v959_v10 }
 0x2a7   :  { %979 = vmatpush.msra.mxu0 %v956_v11 }
 0x2a8   :  { %999 = vmatpush.msra.mxu1 %v957_v46 }
 0x2a9   :  { %980 = vmatpush.msra.mxu0 %v954_v12 }
 0x2aa   :  { %675 = vrot.lane.b32.xlu1 %v2384_v21, %s1897_s29  ;;  %679 = vrot.lane.b32.xlu2 %v2384_v21, %s1892_s30 }
 0x2ab   :  { %671 = vrot.lane.b32.xlu0 %v2384_v21, %s1896_s0  ;;  %1000 = vmatpush.msra.mxu1 %v955_v13 }
 0x2ac   :  { %981 = vmatpush.msra.mxu0 %v952_v14 }
 0x2ad   :  { %1001 = vmatpush.msra.mxu1 %v953_v15 }
 0x2ae   :  { %982 = vmatpush.msra.mxu0 %v950_v16 }
 0x2af   :  { %1002 = vmatpush.msra.mxu1 %v951_v17 }
 0x2b0   :  { %983 = vmatpush.msra.mxu0 %v948_v61 }
 0x2b1   :  { %1003 = vmatpush.msra.mxu1 %v949_v18 }
 0x2b2   :  { %984 = vmatpush.msra.mxu0 %v946_v19 }
 0x2b3   :  { %1004 = vmatpush.msra.mxu1 %v947_v20 }
 0x2b4   :  { %985 = vmatpush.msra.mxu0 %v944_v22 }
 0x2b5   :  { %1005 = vmatpush.msra.mxu1 %v945_v25 }
 0x2b6   :  { %986 = vmatpush.msra.mxu0 %v942_v26 }
 0x2b7   :  { %1006 = vmatpush.msra.mxu1 %v943_v27 }
 0x2b8   :  { %987 = vmatpush.msra.mxu0 %v940_v28 }
 0x2b9   :  { %1007 = vmatpush.msra.mxu1 %v941_v29 }
 0x2fc   :  { %v933_v33 = vpop.permute.xlu2 %932 }
 0x304   :  { %v680_v38 = vpop.permute.xlu2 %679 }
 0x314   :  { %v929_v30 = vpop.permute.xlu1 %928 }
 0x315   :  { %v925_v31 = vpop.permute.xlu0 %924 }
 0x316   :  { %v935_v32 = vsel %vm649_vm7, %v2377_v4, %v925_v31 }
 0x317   :  { %v937_v57 = vsel %vm936_vm0, %v935_v32, %v929_v30 }
 0x318   :  { %v939_v6 = vsel %vm938_vm1, %v937_v57, %v933_v33 }
 0x319   :  { %988 = vmatmul.f32.vlgmr.msra.gmra.mxu0 %v939_v6  ;;  %1008 = vmatmul.f32.vlgmr.msra.gmra.mxu1 %v939_v6 }
 0x31c   :  { %v676_v36 = vpop.permute.xlu1 %675 }
 0x31d   :  { %v672_v35 = vpop.permute.xlu0 %671 }
 0x31e   :  { %v674_v37 = vadd.f32 %v672_v35, %v2384_v21 }
 0x320   :  { %v678_v39 = vadd.f32 %v676_v36, %v674_v37 }
 0x322   :  { %v682_v40 = vadd.f32 %v680_v38, %v678_v39 }
 0x324   :  { %1377 = vrsqrt.f32 %v682_v40  ;;  %vm690_vm2 = vcmp.eq.f32.partialorder %v682_v40, inf  ;;  %v693_v50 = vand.u32 2147483648, %v682_v40  ;;  %vm692_vm3 = vcmp.eq.f32.partialorder %v682_v40, 0.0 }
 0x32a   :  { %v1378_v41 = vpop.eup %1377 }
 0x32b   :  { %v684_v42 = vmul.f32 %v1378_v41, %v682_v40 }
 0x32d   :  { %v685_v43 = vmul.f32 %v1378_v41, %v684_v42 }
 0x32f   :  { %v686_v44 = vmul.f32 0.5, %v685_v43 }
 0x331   :  { %v687_v48 = vsub.f32 1.5, %v686_v44 }
 0x333   :  { %v688_v49 = vmul.f32 %v1378_v41, %v687_v48 }
 0x335   :  { %v689_v51 = vmul.f32 %v688_v49, %v682_v40 }
 0x337   :  { %v691_v52 = vsel %vm690_vm2, %v682_v40, %v689_v51 }
 0x338   :  { %v694_v53 = vsel %vm692_vm3, %v693_v50, %v691_v52 }
 0x339   :  { %695 = vst.msk [vmem:[%s2414_s5] sm:$0xff] %vm649_vm7, %v694_v53 }
 0x396   :  { %v989_v54 = vpop.f32.mrf.mxu0  ;;  %v1009_v55 = vpop.f32.mrf.mxu1 }
 0x397   :  { %1012 = vst [vmem:[#allocation12] sm:$0xff] %v989_v54 }
 0x398   :  { %1013 = vst [vmem:[#allocation12 + $0x8] sm:$0xff] %v1009_v55 }
 0x399   :  { %1871 = dma.done.wait [#allocation4 + $0x8], 16 }
 0x39a   :  { %1872 = vsyncadd [#allocation4 + $0x8], 4294967280 }
 0x39b   :  { %1873 = dma.done.wait [#allocation4 + $0x9], 16 }
 0x39c   :  { %1874 = vsyncadd [#allocation4 + $0x9], 4294967280 }
 0x39d   :  { %1875 = dma.done.wait [#allocation4 + $0xa], 16 }
 0x39e   :  { %1876 = vsyncadd [#allocation4 + $0xa], 4294967280 }
 0x39f   :  { %1877 = dma.done.wait [#allocation4 + $0xb], 16 }
 0x3a0   :  { %1878 = vsyncadd [#allocation4 + $0xb], 4294967280 }
 0x3a1   :  { %1879 = dma.done.wait [#allocation4 + $0xc], 16 }
 0x3a2   :  { %1880 = vsyncadd [#allocation4 + $0xc], 4294967280 }
 0x3a3   :  { %1881 = dma.done.wait [#allocation4 + $0xd], 16 }
 0x3a4   :  { %1882 = vsyncadd [#allocation4 + $0xd], 4294967280 }
 0x3a5   :  { %1883 = dma.done.wait [#allocation4 + $0xe], 16 }
 0x3a6   :  { %1884 = vsyncadd [#allocation4 + $0xe], 4294967280 }
 0x3a7   :  { %1885 = dma.done.wait [#allocation4 + $0xf], 16 }
 0x3a8   :  { %1886 = vsyncadd [#allocation4 + $0xf], 4294967280  ;;  %v1030_v56 = vld [vmem:[#allocation3] sm:$0xff]  ;;  %s1914_s16 = smov [#allocation12]   ;;  %s1066_s9 = sshll.u32 %s2413_s4, 4  ;;  %s1067_s9 = int_to_ptr.hbm [resolvable:$true] %s1066_s9 }
 0x3a9   :  { %v1031_v59 = vmul.f32 %v1030_v56, %v1030_v56  ;;  %s1064_s21 = sshll.u32 %s1914_s16, 4  ;;  %s1065_s21 = int_to_ptr.vmem [resolvable:$true] %s1064_s21 }
 0x3aa   :  { %1069 = dma.vmem_to_hbm [thread:$0]  %s1065_s21, 256, %s1067_s9, [#allocation9]  }
 0x3ab   :  { %1033 = vrot.lane.b32.xlu0 %v1031_v59, %s1896_s0  ;;  %1041 = vrot.lane.b32.xlu1 %v1031_v59, %s1892_s30 }
 0x3b3   :  { %1037 = vrot.lane.b32.xlu0 %v1031_v59, %s1897_s29 }
 0x41d   :  { %v1034_v45 = vpop.permute.xlu0 %1033  ;;  %v1042_v0 = vpop.permute.xlu1 %1041 }
 0x41e   :  { %v1036_v62 = vadd.f32 %v1034_v45, %v1031_v59 }
 0x425   :  { %v1038_v63 = vpop.permute.xlu0 %1037 }
 0x426   :  { %v1040_v1 = vadd.f32 %v1038_v63, %v1036_v62 }
 0x428   :  { %v1044_v2 = vadd.f32 %v1042_v0, %v1040_v1 }
 0x42a   :  { %1379 = vrsqrt.f32 %v1044_v2  ;;  %vm1052_vm4 = vcmp.eq.f32.partialorder %v1044_v2, inf  ;;  %v1055_v60 = vand.u32 2147483648, %v1044_v2  ;;  %vm1054_vm5 = vcmp.eq.f32.partialorder %v1044_v2, 0.0 }
 0x430   :  { %v1380_v58 = vpop.eup %1379 }
 0x431   :  { %v1046_v3 = vmul.f32 %v1380_v58, %v1044_v2 }
 0x433   :  { %v1047_v4 = vmul.f32 %v1380_v58, %v1046_v3 }
 0x435   :  { %v1048_v21 = vmul.f32 0.5, %v1047_v4 }
 0x437   :  { %v1049_v23 = vsub.f32 1.5, %v1048_v21 }
 0x439   :  { %v1050_v24 = vmul.f32 %v1380_v58, %v1049_v23 }
 0x43b   :  { %v1051_v34 = vmul.f32 %v1050_v24, %v1044_v2 }
 0x43d   :  { %v1053_v5 = vsel %vm1052_vm4, %v1044_v2, %v1051_v34 }
 0x43e   :  { %v1056_v7 = vsel %vm1054_vm5, %v1055_v60, %v1053_v5 }
 0x43f   :  { %1320 = vst.msk [vmem:[%s2414_s5 + $0x10] sm:$0xff] %vm649_vm7, %v1056_v7 }
 0x440   :  { %1887 = dma.done.wait [#allocation9], 256  }
 0x441   :  { %1888 = vsyncadd [#allocation9], 4294967040 }
 0x442   :  { %1078 = vsyncpa [#allocation8], 1 }
 0x443   :  { %1079 = vsyncpa [#allocation11], 1 }
 0x444   :  { %1080 = vsyncpa [#allocation9], 1 }
 0x445   :  { %1081 = vsyncmov [#allocation4] }
 0x448   :  { %s1082_s0 = vpop.sfrf %1081 }
 0x449   :  { %p1321_p10 = scmp.ne.s32.totalorder %s1082_s0, 0 }
 0x44b   :  { %1086 = shalt.err (%p1321_p10)  }
 0x44c   :  { %1088 = vsyncmov [#allocation4 + $0x1] }
 0x44f   :  { %s1089_s29 = vpop.sfrf %1088 }
 0x450   :  { %p1322_p11 = scmp.ne.s32.totalorder %s1089_s29, 0 }
 0x452   :  { %1093 = shalt.err (%p1322_p11)  }
 0x453   :  { %1095 = vsyncmov [#allocation4 + $0x2] }
 0x456   :  { %s1096_s3 = vpop.sfrf %1095 }
 0x457   :  { %p1323_p12 = scmp.ne.s32.totalorder %s1096_s3, 0 }
 0x459   :  { %1100 = shalt.err (%p1323_p12)  }
 0x45a   :  { %1102 = vsyncmov [#allocation4 + $0x3] }
 0x45d   :  { %s1103_s17 = vpop.sfrf %1102 }
 0x45e   :  { %p1324_p13 = scmp.ne.s32.totalorder %s1103_s17, 0 }
 0x460   :  { %1107 = shalt.err (%p1324_p13)  }
 0x461   :  { %1109 = vsyncmov [#allocation4 + $0x4] }
 0x464   :  { %s1110_s5 = vpop.sfrf %1109 }
 0x465   :  { %p1325_p0 = scmp.ne.s32.totalorder %s1110_s5, 0 }
 0x467   :  { %1114 = shalt.err (%p1325_p0)  }
 0x468   :  { %1116 = vsyncmov [#allocation4 + $0x5] }
 0x46b   :  { %s1117_s18 = vpop.sfrf %1116 }
 0x46c   :  { %p1326_p1 = scmp.ne.s32.totalorder %s1117_s18, 0 }
 0x46e   :  { %1121 = shalt.err (%p1326_p1)  }
 0x46f   :  { %1123 = vsyncmov [#allocation4 + $0x6] }
 0x472   :  { %s1124_s13 = vpop.sfrf %1123 }
 0x473   :  { %p1327_p2 = scmp.ne.s32.totalorder %s1124_s13, 0 }
 0x475   :  { %1128 = shalt.err (%p1327_p2)  }
 0x476   :  { %1130 = vsyncmov [#allocation4 + $0x7] }
 0x479   :  { %s1131_s10 = vpop.sfrf %1130 }
 0x47a   :  { %p1328_p3 = scmp.ne.s32.totalorder %s1131_s10, 0 }
 0x47c   :  { %1135 = shalt.err (%p1328_p3)  }
 0x47d   :  { %1137 = vsyncmov [#allocation4 + $0x8] }
 0x480   :  { %s1138_s27 = vpop.sfrf %1137 }
 0x481   :  { %p1329_p4 = scmp.ne.s32.totalorder %s1138_s27, 0 }
 0x483   :  { %1142 = shalt.err (%p1329_p4)  }
 0x484   :  { %1144 = vsyncmov [#allocation4 + $0x9] }
 0x487   :  { %s1145_s20 = vpop.sfrf %1144 }
 0x488   :  { %p1330_p5 = scmp.ne.s32.totalorder %s1145_s20, 0 }
 0x48a   :  { %1149 = shalt.err (%p1330_p5)  }
 0x48b   :  { %1151 = vsyncmov [#allocation4 + $0xa] }
 0x48e   :  { %s1152_s12 = vpop.sfrf %1151 }
 0x48f   :  { %p1331_p6 = scmp.ne.s32.totalorder %s1152_s12, 0 }
 0x491   :  { %1156 = shalt.err (%p1331_p6)  }
 0x492   :  { %1158 = vsyncmov [#allocation4 + $0xb] }
 0x495   :  { %s1159_s2 = vpop.sfrf %1158 }
 0x496   :  { %p1332_p7 = scmp.ne.s32.totalorder %s1159_s2, 0 }
 0x498   :  { %1163 = shalt.err (%p1332_p7)  }
 0x499   :  { %1165 = vsyncmov [#allocation4 + $0xc] }
 0x49c   :  { %s1166_s14 = vpop.sfrf %1165 }
 0x49d   :  { %p1333_p8 = scmp.ne.s32.totalorder %s1166_s14, 0 }
 0x49f   :  { %1170 = shalt.err (%p1333_p8)  }
 0x4a0   :  { %1172 = vsyncmov [#allocation4 + $0xd] }
 0x4a3   :  { %s1173_s11 = vpop.sfrf %1172 }
 0x4a4   :  { %p1334_p9 = scmp.ne.s32.totalorder %s1173_s11, 0 }
 0x4a6   :  { %1177 = shalt.err (%p1334_p9)  }
 0x4a7   :  { %1179 = vsyncmov [#allocation4 + $0xe] }
 0x4aa   :  { %s1180_s15 = vpop.sfrf %1179 }
 0x4ab   :  { %p1335_p10 = scmp.ne.s32.totalorder %s1180_s15, 0 }
 0x4ad   :  { %1184 = shalt.err (%p1335_p10)  }
 0x4ae   :  { %1186 = vsyncmov [#allocation4 + $0xf] }
 0x4b1   :  { %s1187_s8 = vpop.sfrf %1186 }
 0x4b2   :  { %p1336_p11 = scmp.ne.s32.totalorder %s1187_s8, 0 }
 0x4b4   :  { %1191 = shalt.err (%p1336_p11)  }

</bundles_post_ra>
